<compile_context>
chip_gen: v7x
topology: tpu7x:2x2x1
jax: 0.10.0
libtpu: 0.0.40
codegen_flags: <defaults>
</compile_context>

<pallas_src>
import jax
import jax.numpy as jnp
from jax.experimental import pallas as pl
from jax.experimental.pallas import tpu as pltpu


def _classifier_kernel(x_ref, w1_ref, b1_ref, w2_ref, b2_ref, w3_ref, b3_ref,
                       o_ref):
    # ---- fc1 + relu  (bf16 inputs, f32 accumulation) ----
    h1 = jnp.dot(x_ref[...], w1_ref[...], preferred_element_type=jnp.float32)
    h1 = jnp.maximum(h1 + b1_ref[...], 0.0).astype(jnp.bfloat16)

    # ---- fc2 + relu ----
    h2 = jnp.dot(h1, w2_ref[...], preferred_element_type=jnp.float32)
    h2 = jnp.maximum(h2 + b2_ref[...], 0.0).astype(jnp.bfloat16)

    # ---- fc3 (keep logits in f32) ----
    logits = jnp.dot(h2, w3_ref[...], preferred_element_type=jnp.float32)
    logits = logits + b3_ref[...]

    # ---- log_softmax over dim=1 (numerically stable, f32) ----
    m = jnp.max(logits, axis=1, keepdims=True)
    shifted = logits - m
    lse = jnp.log(jnp.sum(jnp.exp(shifted), axis=1, keepdims=True))
    o_ref[...] = (shifted - lse).astype(o_ref.dtype)


def classifier_forward(x, params, *, block_b=512):
    """x: (B, 4096) float32. params: dict of w1,b1,w2,b2,w3,b3 (f32)."""
    # bf16 data path for x / weights; biases stay f32.
    w1 = params["w1"].astype(jnp.bfloat16)
    w2 = params["w2"].astype(jnp.bfloat16)
    w3 = params["w3"].astype(jnp.bfloat16)
    b1 = params["b1"].astype(jnp.float32)
    b2 = params["b2"].astype(jnp.float32)
    b3 = params["b3"].astype(jnp.float32)

    B, D = x.shape
    numclasses = params["w3"].shape[1]

    # Batch tile: multiple of 8 (sublane), default 512 (multiple of 256 for
    # full MXU M occupancy on v6e).  Pad B up to a multiple of TB.
    TB = min(block_b, pl.cdiv(B, 8) * 8)
    B_pad = pl.cdiv(B, TB) * TB

    x_bf16 = x.astype(jnp.bfloat16)
    if B_pad != B:
        x_bf16 = jnp.pad(x_bf16, ((0, B_pad - B), (0, 0)))

    def resident(shape):
        # constant block index -> DMA'd once, stays in VMEM for all grid steps
        return pl.BlockSpec(shape, lambda i: (0, 0))

    out = pl.pallas_call(
        _classifier_kernel,
        out_shape=jax.ShapeDtypeStruct((B_pad, numclasses), jnp.float32),
        grid=(B_pad // TB,),
        in_specs=[
            pl.BlockSpec((TB, D), lambda i: (i, 0)),        # x: streamed
            resident(w1.shape), resident(b1.shape),
            resident(w2.shape), resident(b2.shape),
            resident(w3.shape), resident(b3.shape),
        ],
        out_specs=pl.BlockSpec((TB, numclasses), lambda i: (i, 0)),
        compiler_params=pltpu.CompilerParams(
            dimension_semantics=("parallel",),   # v7x: 2 TCs share the batch grid
            vmem_limit_bytes=48 << 20,           # headroom on v7x's 64 MiB VMEM
        ),
    )(x_bf16, w1, b1, w2, b2, w3, b3)

    return out[:B] if B_pad != B else out


def init_params(key, numclasses):
    """Deterministic synthetic parameters (shapes match nn.Linear layers)."""
    ks = jax.random.split(key, 6)

    def lin(kw, kb, fan_in, fan_out):
        # mimic torch's uniform(-1/sqrt(fan_in), 1/sqrt(fan_in)) init
        bound = 1.0 / jnp.sqrt(jnp.float32(fan_in))
        w = jax.random.uniform(kw, (fan_in, fan_out), jnp.float32,
                               -bound, bound)          # stored (in, out)
        b = jax.random.uniform(kb, (1, fan_out), jnp.float32, -bound, bound)
        return w, b

    w1, b1 = lin(ks[0], ks[1], 4096, 256)
    w2, b2 = lin(ks[2], ks[3], 256, 128)
    w3, b3 = lin(ks[4], ks[5], 128, numclasses)
    return {"w1": w1, "b1": b1, "w2": w2, "b2": b2, "w3": w3, "b3": b3}


def _reference_forward_f32(x, p):
    h1 = jnp.maximum(x @ p["w1"] + p["b1"], 0.0)
    h2 = jnp.maximum(h1 @ p["w2"] + p["b2"], 0.0)
    logits = h2 @ p["w3"] + p["b3"]
    return jax.nn.log_softmax(logits, axis=1)


def _reference_forward_bf16(x, p):
    # Mirrors the kernel's bf16-input / f32-accumulate data path.
    f32 = jnp.float32
    h1 = jnp.dot(x.astype(jnp.bfloat16), p["w1"].astype(jnp.bfloat16),
                 preferred_element_type=f32) + p["b1"]
    h1 = jnp.maximum(h1, 0.0).astype(jnp.bfloat16)
    h2 = jnp.dot(h1, p["w2"].astype(jnp.bfloat16),
                 preferred_element_type=f32) + p["b2"]
    h2 = jnp.maximum(h2, 0.0).astype(jnp.bfloat16)
    logits = jnp.dot(h2, p["w3"].astype(jnp.bfloat16),
                     preferred_element_type=f32) + p["b3"]
    return jax.nn.log_softmax(logits, axis=1)


if __name__ == "__main__":
    key = jax.random.PRNGKey(0)
    k_x, k_p, k_x2 = jax.random.split(key, 3)

    NUMCLASSES = 10
    params = init_params(k_p, NUMCLASSES)

    # --- small batch (single grid step, padded-to-8 tile) ---
    B = 8
    x = jax.random.normal(k_x, (B, 4096), jnp.float32)
    out = jax.block_until_ready(classifier_forward(x, params))
    assert out.shape == (B, NUMCLASSES)
    assert jnp.allclose(out, _reference_forward_bf16(x, params),
                        atol=2e-3, rtol=2e-3)
    assert jnp.allclose(out, _reference_forward_f32(x, params),
                        atol=5e-2, rtol=5e-2)

    # --- multi-step grid with batch padding (TB=128, B=260 -> grid of 3) ---
    B2 = 260
    x2 = jax.random.normal(k_x2, (B2, 4096), jnp.float32)
    out2 = jax.block_until_ready(classifier_forward(x2, params, block_b=128))
    assert out2.shape == (B2, NUMCLASSES)
    assert jnp.allclose(out2, _reference_forward_bf16(x2, params),
                        atol=2e-3, rtol=2e-3)

    print("KERNEL_OK")
</pallas_src>

<mosaic_0001>
module attributes {stable_mosaic.version = 11 : i64} {
  func.func @_classifier_kernel(%arg0: i32, %arg1: memref<8x4096xbf16, #tpu.memory_space<vmem>>, %arg2: memref<4096x256xbf16, #tpu.memory_space<vmem>>, %arg3: memref<1x256xf32, #tpu.memory_space<vmem>>, %arg4: memref<256x128xbf16, #tpu.memory_space<vmem>>, %arg5: memref<1x128xf32, #tpu.memory_space<vmem>>, %arg6: memref<128x10xbf16, #tpu.memory_space<vmem>>, %arg7: memref<1x10xf32, #tpu.memory_space<vmem>>, %arg8: memref<8x10xf32, #tpu.memory_space<vmem>>) attributes {dimension_semantics = [#tpu.dimension_semantics<parallel>], iteration_bounds = array<i64: 1>, scalar_prefetch = 0 : i64, scratch_operands = 0 : i64, tpu.core_type = #tpu.core_type<tc>, window_params = [{transform_indices = @transform_0, window_bounds = array<i64: 8, 4096>}, {pipeline_mode = #tpu.pipeline_mode<synchronous>, transform_indices = @transform_1, window_bounds = array<i64: 4096, 256>}, {pipeline_mode = #tpu.pipeline_mode<synchronous>, transform_indices = @transform_2, window_bounds = array<i64: 1, 256>}, {pipeline_mode = #tpu.pipeline_mode<synchronous>, transform_indices = @transform_3, window_bounds = array<i64: 256, 128>}, {pipeline_mode = #tpu.pipeline_mode<synchronous>, transform_indices = @transform_4, window_bounds = array<i64: 1, 128>}, {pipeline_mode = #tpu.pipeline_mode<synchronous>, transform_indices = @transform_5, window_bounds = array<i64: 128, 10>}, {pipeline_mode = #tpu.pipeline_mode<synchronous>, transform_indices = @transform_6, window_bounds = array<i64: 1, 10>}, {transform_indices = @transform_7, window_bounds = array<i64: 8, 10>}]} {
    %c0 = arith.constant 0 : index
    %c0_0 = arith.constant 0 : index
    %0 = vector.load %arg1[%c0, %c0_0] : memref<8x4096xbf16, #tpu.memory_space<vmem>>, vector<8x4096xbf16>
    %c0_1 = arith.constant 0 : index
    %c0_2 = arith.constant 0 : index
    %1 = vector.load %arg2[%c0_1, %c0_2] : memref<4096x256xbf16, #tpu.memory_space<vmem>>, vector<4096x256xbf16>
    %cst = arith.constant dense<0.000000e+00> : vector<8x256xf32>
    %2 = tpu.matmul %0, %1, %cst {dimension_numbers = #tpu.dot_dimension_numbers<[1], [0], [0], [1], [0, 0, 1, 1], [], []>} : vector<8x4096xbf16>, vector<4096x256xbf16>, vector<8x256xf32> -> vector<8x256xf32>
    %c0_3 = arith.constant 0 : index
    %c0_4 = arith.constant 0 : index
    %3 = vector.load %arg3[%c0_3, %c0_4] : memref<1x256xf32, #tpu.memory_space<vmem>>, vector<1x256xf32>
    %4 = vector.broadcast %3 : vector<1x256xf32> to vector<8x256xf32>
    %5 = arith.addf %2, %4 : vector<8x256xf32>
    %cst_5 = arith.constant 0.000000e+00 : f32
    %6 = vector.broadcast %cst_5 : f32 to vector<8x256xf32>
    %7 = arith.maximumf %5, %6 : vector<8x256xf32>
    %8 = arith.truncf %7 : vector<8x256xf32> to vector<8x256xbf16>
    %c0_6 = arith.constant 0 : index
    %c0_7 = arith.constant 0 : index
    %9 = vector.load %arg4[%c0_6, %c0_7] : memref<256x128xbf16, #tpu.memory_space<vmem>>, vector<256x128xbf16>
    %cst_8 = arith.constant dense<0.000000e+00> : vector<8x128xf32>
    %10 = tpu.matmul %8, %9, %cst_8 {dimension_numbers = #tpu.dot_dimension_numbers<[1], [0], [0], [1], [0, 0, 1, 1], [], []>} : vector<8x256xbf16>, vector<256x128xbf16>, vector<8x128xf32> -> vector<8x128xf32>
    %c0_9 = arith.constant 0 : index
    %c0_10 = arith.constant 0 : index
    %11 = vector.load %arg5[%c0_9, %c0_10] : memref<1x128xf32, #tpu.memory_space<vmem>>, vector<1x128xf32>
    %12 = vector.broadcast %11 : vector<1x128xf32> to vector<8x128xf32>
    %13 = arith.addf %10, %12 : vector<8x128xf32>
    %cst_11 = arith.constant 0.000000e+00 : f32
    %14 = vector.broadcast %cst_11 : f32 to vector<8x128xf32>
    %15 = arith.maximumf %13, %14 : vector<8x128xf32>
    %16 = arith.truncf %15 : vector<8x128xf32> to vector<8x128xbf16>
    %c0_12 = arith.constant 0 : index
    %c0_13 = arith.constant 0 : index
    %17 = vector.load %arg6[%c0_12, %c0_13] : memref<128x10xbf16, #tpu.memory_space<vmem>>, vector<128x10xbf16>
    %cst_14 = arith.constant dense<0.000000e+00> : vector<8x10xf32>
    %18 = tpu.matmul %16, %17, %cst_14 {dimension_numbers = #tpu.dot_dimension_numbers<[1], [0], [0], [1], [0, 0, 1, 1], [], []>} : vector<8x128xbf16>, vector<128x10xbf16>, vector<8x10xf32> -> vector<8x10xf32>
    %c0_15 = arith.constant 0 : index
    %c0_16 = arith.constant 0 : index
    %19 = vector.load %arg7[%c0_15, %c0_16] : memref<1x10xf32, #tpu.memory_space<vmem>>, vector<1x10xf32>
    %20 = vector.broadcast %19 : vector<1x10xf32> to vector<8x10xf32>
    %21 = arith.addf %18, %20 : vector<8x10xf32>
    %cst_17 = arith.constant dense<0xFF800000> : vector<8xf32>
    %22 = vector.multi_reduction <maximumf>, %21, %cst_17 [1] : vector<8x10xf32> to vector<8xf32>
    %23 = vector.shape_cast %22 : vector<8xf32> to vector<8x1xf32>
    %24 = vector.broadcast %23 : vector<8x1xf32> to vector<8x10xf32>
    %25 = arith.subf %21, %24 : vector<8x10xf32>
    %26 = math.exp %25 : vector<8x10xf32>
    %cst_18 = arith.constant dense<0.000000e+00> : vector<8xf32>
    %27 = vector.multi_reduction <add>, %26, %cst_18 [1] : vector<8x10xf32> to vector<8xf32>
    %28 = vector.shape_cast %27 : vector<8xf32> to vector<8x1xf32>
    %29 = math.log %28 : vector<8x1xf32>
    %30 = vector.broadcast %29 : vector<8x1xf32> to vector<8x10xf32>
    %31 = arith.subf %25, %30 : vector<8x10xf32>
    %c0_19 = arith.constant 0 : index
    %c0_20 = arith.constant 0 : index
    %32 = vector.load %arg8[%c0_19, %c0_20] : memref<8x10xf32, #tpu.memory_space<vmem>>, vector<8x10xf32>
    tpu.vector_store %arg8[%c0_19, %c0_20], %31 {strides = array<i32>} : memref<8x10xf32, #tpu.memory_space<vmem>>, vector<8x10xf32>,
    return
  }
  func.func @transform_0(%arg0: i32) -> (i32, i32) {
    %c0_i32 = arith.constant 0 : i32
    %c0_i32_0 = arith.constant 0 : i32
    return %arg0, %c0_i32 : i32, i32
  }
  func.func @transform_1(%arg0: i32) -> (i32, i32) {
    %c0_i32 = arith.constant 0 : i32
    %c0_i32_0 = arith.constant 0 : i32
    %c0_i32_1 = arith.constant 0 : i32
    return %c0_i32, %c0_i32_0 : i32, i32
  }
  func.func @transform_2(%arg0: i32) -> (i32, i32) {
    %c0_i32 = arith.constant 0 : i32
    %c0_i32_0 = arith.constant 0 : i32
    %c0_i32_1 = arith.constant 0 : i32
    return %c0_i32, %c0_i32_0 : i32, i32
  }
  func.func @transform_3(%arg0: i32) -> (i32, i32) {
    %c0_i32 = arith.constant 0 : i32
    %c0_i32_0 = arith.constant 0 : i32
    %c0_i32_1 = arith.constant 0 : i32
    return %c0_i32, %c0_i32_0 : i32, i32
  }
  func.func @transform_4(%arg0: i32) -> (i32, i32) {
    %c0_i32 = arith.constant 0 : i32
    %c0_i32_0 = arith.constant 0 : i32
    %c0_i32_1 = arith.constant 0 : i32
    return %c0_i32, %c0_i32_0 : i32, i32
  }
  func.func @transform_5(%arg0: i32) -> (i32, i32) {
    %c0_i32 = arith.constant 0 : i32
    %c0_i32_0 = arith.constant 0 : i32
    %c0_i32_1 = arith.constant 0 : i32
    return %c0_i32, %c0_i32_0 : i32, i32
  }
  func.func @transform_6(%arg0: i32) -> (i32, i32) {
    %c0_i32 = arith.constant 0 : i32
    %c0_i32_0 = arith.constant 0 : i32
    %c0_i32_1 = arith.constant 0 : i32
    return %c0_i32, %c0_i32_0 : i32, i32
  }
  func.func @transform_7(%arg0: i32) -> (i32, i32) {
    %c0_i32 = arith.constant 0 : i32
    %c0_i32_0 = arith.constant 0 : i32
    return %arg0, %c0_i32 : i32, i32
  }
}

</mosaic_0001>

<bundles_post_ra>
// kernel: tpu_custom_call.1
= control target key start
LH: loop header
LB: loop body
LE: loop exit
PB: predicated region body
PF: predicated region fallthrough
CT: control target
= control target key end

     0   :  { %12 = vsyncpa [#allocation3], 0  ;;  %s6228_s0 = inlined_call_operand.hbm [shape: bf16[8,4096], index: 0, kind: input, shape index: {}]   ;;  %s6229_s1 = inlined_call_operand.hbm [shape: bf16[4096,256], index: 1, kind: input, shape index: {}]   ;;  %s6230_s2 = inlined_call_operand.hbm [shape: f32[1,256], index: 2, kind: input, shape index: {}]   ;;  %s6231_s3 = inlined_call_operand.hbm [shape: bf16[256,128], index: 3, kind: input, shape index: {}]   ;;  %s6232_s4 = inlined_call_operand.hbm [shape: f32[1,128], index: 4, kind: input, shape index: {}]   ;;  %s6233_s5 = inlined_call_operand.vmem [shape: bf16[128,10], index: 5, kind: input, shape index: {}]   ;;  %s6234_s6 = inlined_call_operand.hbm [shape: f32[1,10], index: 6, kind: input, shape index: {}]   ;;  %s6235_s7 = inlined_call_operand.hbm [shape: f32[8,10], index: 7, kind: output, shape index: {}]  }
   0x1   :  { %13 = vsyncpa [#allocation6], 0 }
   0x2   :  { %14 = vsyncpa [#allocation9], 0 }
   0x3   :  { %15 = vsyncpa [#allocation12], 0 }
   0x4   :  { %16 = vsyncpa [#allocation4], 0  ;;  %s5980_s24 = smov [#allocation5]   ;;  %s5816_s28 = scalar_lea.hbm %s6229_s1, 65536 }
   0x5   :  { %s32_s25 = sshll.u32 %s5980_s24, 4  ;;  %p5817_p0 = scmp.ne.s32.totalorder %s6229_s1, %s5816_s28  ;;  %s33_s25 = int_to_ptr.vmem [resolvable:$true] %s32_s25 }
   0x6   :  { %p5820_p1 = scmp.lt.u32.totalorder %s5816_s28, %s6229_s1 }
   0x8   :  { %p5822_p2 = pnand %p5820_p1, %p5817_p0 }
   0xa   :  { %5825 = shalt.err (!%p5822_p2)
}
   0xb   :  { %s5826_s10 = scalar_lea.vmem %s33_s25, 65536  ;;  %p5831_p4 = scmp.lt.s32.totalorder %s33_s25, %s33_s25 }
   0xc   :  { %p5827_p3 = scmp.ne.s32.totalorder %s33_s25, %s5826_s10  ;;  %p5832_p5 = scmp.lt.s32.totalorder %s5826_s10, %s5826_s10 }
   0xe   :  { %p5833_p6 = por %p5832_p5, %p5831_p4 }
  0x10   :  { %p5834_p7 = pnand %p5833_p6, %p5827_p3 }
  0x12   :  { %5837 = shalt.err (!%p5834_p7)
}
  0x13   :  { %s5981_s11 = smov 128   ;;  %s5982_s12 = smov 8  }
  0x14   :  { %38 = dma.hbm_to_vmem [thread:$0]  %s6229_s1, 65536, %s33_s25, [#allocation6], %s5981_s11, %s5981_s11, %s5982_s12  }
  0x15   :  { %s5983_s15 = smov [#allocation8]   ;;  %s5838_s19 = scalar_lea.hbm %s6231_s3, 2048 }
  0x16   :  { %s54_s16 = sshll.u32 %s5983_s15, 4  ;;  %p5839_p8 = scmp.ne.s32.totalorder %s6231_s3, %s5838_s19  ;;  %s55_s16 = int_to_ptr.vmem [resolvable:$true] %s54_s16 }
  0x17   :  { %p5842_p9 = scmp.lt.u32.totalorder %s5838_s19, %s6231_s3 }
  0x19   :  { %p5844_p10 = pnand %p5842_p9, %p5839_p8 }
  0x1b   :  { %5847 = shalt.err (!%p5844_p10)
}
  0x1c   :  { %s5848_s24 = scalar_lea.vmem %s55_s16, 2048  ;;  %p5853_p12 = scmp.lt.s32.totalorder %s55_s16, %s55_s16 }
  0x1d   :  { %p5849_p11 = scmp.ne.s32.totalorder %s55_s16, %s5848_s24  ;;  %p5854_p13 = scmp.lt.s32.totalorder %s5848_s24, %s5848_s24 }
  0x1f   :  { %p5855_p0 = por %p5854_p13, %p5853_p12 }
  0x21   :  { %p5856_p1 = pnand %p5855_p0, %p5849_p11 }
  0x23   :  { %5859 = shalt.err (!%p5856_p1)
}
  0x24   :  { %s5984_s1 = smov 64   ;;  %s5985_s25 = smov 4  }
  0x25   :  { %60 = dma.hbm_to_vmem [thread:$0]  %s6231_s3, 2048, %s55_s16, [#allocation9], %s5984_s1, %s5984_s1, %s5985_s25  }
  0x26   :  { %s5986_s28 = smov [#allocation2]   ;;  %s5987_s30 = smov [#allocation7]  }
  0x27   :  { %s23_s29 = sshll.u32 %s5986_s28, 4  ;;  %s45_s8 = sshll.u32 %s5987_s30, 4  ;;  %s24_s29 = int_to_ptr.vmem [resolvable:$true] %s23_s29  ;;  %s46_s8 = int_to_ptr.vmem [resolvable:$true] %s45_s8 }
  0x28   :  { %s5860_s11 = scalar_lea.hbm %s6228_s0, 2048 }
  0x29   :  { %p5861_p2 = scmp.ne.s32.totalorder %s6228_s0, %s5860_s11  ;;  %p5864_p3 = scmp.lt.u32.totalorder %s5860_s11, %s6228_s0 }
  0x2b   :  { %p5866_p4 = pnand %p5864_p3, %p5861_p2 }
  0x2d   :  { %5869 = shalt.err (!%p5866_p4)
}
  0x2e   :  { %s5870_s3 = scalar_lea.vmem %s24_s29, 2048  ;;  %p5875_p6 = scmp.lt.s32.totalorder %s24_s29, %s24_s29 }
  0x2f   :  { %p5871_p5 = scmp.ne.s32.totalorder %s24_s29, %s5870_s3  ;;  %p5876_p7 = scmp.lt.s32.totalorder %s5870_s3, %s5870_s3 }
  0x31   :  { %p5877_p8 = por %p5876_p7, %p5875_p6 }
  0x33   :  { %p5878_p9 = pnand %p5877_p8, %p5871_p5 }
  0x35   :  { %5881 = shalt.err (!%p5878_p9)
}
  0x36   :  { %26 = dma.hbm_to_vmem [thread:$0]  %s6228_s0, 2048, %s24_s29, [#allocation3]  }
  0x37   :  { %s5882_s20 = scalar_lea.hbm %s6230_s2, 32 }
  0x38   :  { %p5883_p10 = scmp.ne.s32.totalorder %s6230_s2, %s5882_s20  ;;  %p5886_p11 = scmp.lt.u32.totalorder %s5882_s20, %s6230_s2 }
  0x3a   :  { %p5888_p12 = pnand %p5886_p11, %p5883_p10 }
  0x3c   :  { %5891 = shalt.err (!%p5888_p12)
}
  0x3d   :  { %s5892_s1 = scalar_lea.vmem %s46_s8, 32  ;;  %p5897_p0 = scmp.lt.s32.totalorder %s46_s8, %s46_s8 }
  0x3e   :  { %p5893_p13 = scmp.ne.s32.totalorder %s46_s8, %s5892_s1  ;;  %p5898_p1 = scmp.lt.s32.totalorder %s5892_s1, %s5892_s1 }
  0x40   :  { %p5899_p2 = por %p5898_p1, %p5897_p0 }
  0x42   :  { %p5900_p3 = pnand %p5899_p2, %p5893_p13 }
  0x44   :  { %5903 = shalt.err (!%p5900_p3)
}
  0x45   :  { %48 = dma.hbm_to_vmem [thread:$0]  %s6230_s2, 32, %s46_s8, [#allocation6]  }
  0x46   :  { %s5988_s26 = smov [#allocation10]   ;;  %s5989_s28 = smov [#allocation11]  }
  0x47   :  { %s67_s27 = sshll.u32 %s5988_s26, 4  ;;  %s79_s29 = sshll.u32 %s5989_s28, 4  ;;  %s68_s27 = int_to_ptr.vmem [resolvable:$true] %s67_s27  ;;  %s80_s29 = int_to_ptr.vmem [resolvable:$true] %s79_s29 }
  0x48   :  { %s5904_s10 = scalar_lea.hbm %s6232_s4, 16 }
  0x49   :  { %p5905_p4 = scmp.ne.s32.totalorder %s6232_s4, %s5904_s10  ;;  %p5908_p5 = scmp.lt.u32.totalorder %s5904_s10, %s6232_s4 }
  0x4b   :  { %p5910_p6 = pnand %p5908_p5, %p5905_p4 }
  0x4d   :  { %5913 = shalt.err (!%p5910_p6)
}
  0x4e   :  { %s5914_s2 = scalar_lea.vmem %s68_s27, 16  ;;  %s5918_s8 = scalar_lea.vmem %s68_s27, 32 }
  0x4f   :  { %p5915_p7 = scmp.ne.s32.totalorder %s68_s27, %s5914_s2  ;;  %p5919_p8 = scmp.lt.s32.totalorder %s68_s27, %s68_s27 }
  0x50   :  { %p5920_p9 = scmp.lt.s32.totalorder %s5918_s8, %s5914_s2 }
  0x52   :  { %p5921_p10 = por %p5920_p9, %p5919_p8 }
  0x54   :  { %p5922_p11 = pnand %p5921_p10, %p5915_p7 }
  0x56   :  { %5925 = shalt.err (!%p5922_p11)
}
  0x57   :  { %70 = dma.hbm_to_vmem [thread:$0]  %s6232_s4, 16, %s68_s27, [#allocation9]  }
  0x58   :  { %s5926_s18 = scalar_lea.hbm %s6234_s6, 16 }
  0x59   :  { %p5927_p12 = scmp.ne.s32.totalorder %s6234_s6, %s5926_s18  ;;  %p5930_p13 = scmp.lt.u32.totalorder %s5926_s18, %s6234_s6 }
  0x5b   :  { %p5932_p0 = pnand %p5930_p13, %p5927_p12 }
  0x5d   :  { %5935 = shalt.err (!%p5932_p0)
}
  0x5e   :  { %s5936_s23 = scalar_lea.vmem %s80_s29, 16  ;;  %s5940_s24 = scalar_lea.vmem %s80_s29, 32 }
  0x5f   :  { %p5937_p1 = scmp.ne.s32.totalorder %s80_s29, %s5936_s23  ;;  %p5941_p2 = scmp.lt.s32.totalorder %s80_s29, %s80_s29 }
  0x60   :  { %p5942_p3 = scmp.lt.s32.totalorder %s5940_s24, %s5936_s23 }
  0x62   :  { %p5943_p4 = por %p5942_p3, %p5941_p2 }
  0x64   :  { %p5944_p5 = pnand %p5943_p4, %p5937_p1 }
  0x66   :  { %5947 = shalt.err (!%p5944_p5)
}
  0x67   :  { %82 = dma.hbm_to_vmem [thread:$0]  %s6234_s6, 16, %s80_s29, [#allocation12]  }
  0x68   :  { %5970 = dma.done.wait [#allocation3], 2048  }
  0x69   :  { %5971 = vsyncadd [#allocation3], 4294965248 }
  0x6a   :  { %5972 = dma.done.wait [#allocation6], 65568  }
  0x6b   :  { %5973 = vsyncadd [#allocation6], 4294901728 }
  0x6c   :  { %5974 = dma.done.wait [#allocation9], 2064  }
  0x6d   :  { %5975 = vsyncadd [#allocation9], 4294965232 }
  0x6e   :  { %5976 = dma.done.wait [#allocation12], 16  }
  0x6f   :  { %5977 = vsyncadd [#allocation12], 4294967280  ;;  %v4988_v0 = vld [vmem:[#allocation5 + $0x4] ss:$8 sps:$4 sm:$0xff]   ;;  %v4992_v2 = vld [vmem:[#allocation5] ss:$8 sps:$4 sm:$0xff]  }
  0x70   :  { %v4990_v1 = vld [vmem:[#allocation5 + $0x704] ss:$8 sps:$4 sm:$0xff]   ;;  %3314 = vmatprep.subr.bf16.mxu1 %v4988_v0  ;;  %v4993_v3 = vld [vmem:[#allocation5 + $0x700] ss:$8 sps:$4 sm:$0xff]   ;;  %v4994_v4 = vld [vmem:[#allocation5 + $0x14] ss:$8 sps:$4 sm:$0xff]  }
  0x71   :  { %3601 = vmatprep.subr.bf16.mxu0 %v4990_v1  ;;  %3315 = vmatpush1.bf16.msra.mxu1 %v4992_v2  ;;  %v4996_v5 = vld [vmem:[#allocation5 + $0x714] ss:$8 sps:$4 sm:$0xff]   ;;  %v4998_v6 = vld [vmem:[#allocation5 + $0x10] ss:$8 sps:$4 sm:$0xff]   ;;  %v5000_v8 = vld [vmem:[#allocation5 + $0x24] ss:$8 sps:$4 sm:$0xff]  }
  0x72   :  { %3602 = vmatpush1.bf16.msra.mxu0 %v4993_v3  ;;  %3316 = vmatprep.subr.bf16.mxu1 %v4994_v4  ;;  %v4999_v7 = vld [vmem:[#allocation5 + $0x710] ss:$8 sps:$4 sm:$0xff]   ;;  %v5002_v9 = vld [vmem:[#allocation5 + $0x724] ss:$8 sps:$4 sm:$0xff]   ;;  %v5004_v10 = vld [vmem:[#allocation5 + $0x20] ss:$8 sps:$4 sm:$0xff]  }
  0x73   :  { %3603 = vmatprep.subr.bf16.mxu0 %v4996_v5  ;;  %v5005_v11 = vld [vmem:[#allocation5 + $0x720] ss:$8 sps:$4 sm:$0xff]   ;;  %v5006_v12 = vld [vmem:[#allocation5 + $0x34] ss:$8 sps:$4 sm:$0xff]   ;;  %v5010_v14 = vld [vmem:[#allocation5 + $0x30] ss:$8 sps:$4 sm:$0xff]  }
  0x74   :  { %v5008_v13 = vld [vmem:[#allocation5 + $0x734] ss:$8 sps:$4 sm:$0xff]   ;;  %v5011_v15 = vld [vmem:[#allocation5 + $0x730] ss:$8 sps:$4 sm:$0xff]   ;;  %v5012_v16 = vld [vmem:[#allocation5 + $0x44] ss:$8 sps:$4 sm:$0xff]  }
  0x75   :  { %3317 = vmatpush1.bf16.msra.mxu1 %v4998_v6  ;;  %v5014_v17 = vld [vmem:[#allocation5 + $0x744] ss:$8 sps:$4 sm:$0xff]   ;;  %v5016_v18 = vld [vmem:[#allocation5 + $0x40] ss:$8 sps:$4 sm:$0xff]   ;;  %v5018_v20 = vld [vmem:[#allocation5 + $0x54] ss:$8 sps:$4 sm:$0xff]  }
  0x76   :  { %3604 = vmatpush1.bf16.msra.mxu0 %v4999_v7  ;;  %3318 = vmatprep.subr.bf16.mxu1 %v5000_v8  ;;  %v5017_v19 = vld [vmem:[#allocation5 + $0x740] ss:$8 sps:$4 sm:$0xff]   ;;  %v5020_v21 = vld [vmem:[#allocation5 + $0x754] ss:$8 sps:$4 sm:$0xff]   ;;  %v5022_v22 = vld [vmem:[#allocation5 + $0x50] ss:$8 sps:$4 sm:$0xff]  }
  0x77   :  { %3605 = vmatprep.subr.bf16.mxu0 %v5002_v9  ;;  %v5023_v23 = vld [vmem:[#allocation5 + $0x750] ss:$8 sps:$4 sm:$0xff]   ;;  %v5024_v24 = vld [vmem:[#allocation5 + $0x64] ss:$8 sps:$4 sm:$0xff]   ;;  %v5028_v26 = vld [vmem:[#allocation5 + $0x60] ss:$8 sps:$4 sm:$0xff]  }
  0x78   :  { %v5026_v25 = vld [vmem:[#allocation5 + $0x764] ss:$8 sps:$4 sm:$0xff]   ;;  %v5029_v27 = vld [vmem:[#allocation5 + $0x760] ss:$8 sps:$4 sm:$0xff]   ;;  %v5030_v28 = vld [vmem:[#allocation5 + $0x74] ss:$8 sps:$4 sm:$0xff]  }
  0x79   :  { %3319 = vmatpush1.bf16.msra.mxu1 %v5004_v10  ;;  %v5032_v29 = vld [vmem:[#allocation5 + $0x774] ss:$8 sps:$4 sm:$0xff]   ;;  %v5034_v30 = vld [vmem:[#allocation5 + $0x70] ss:$8 sps:$4 sm:$0xff]   ;;  %v5036_v32 = vld [vmem:[#allocation5 + $0x84] ss:$8 sps:$4 sm:$0xff]  }
  0x7a   :  { %3606 = vmatpush1.bf16.msra.mxu0 %v5005_v11  ;;  %3320 = vmatprep.subr.bf16.mxu1 %v5006_v12  ;;  %v5035_v31 = vld [vmem:[#allocation5 + $0x770] ss:$8 sps:$4 sm:$0xff]   ;;  %v5038_v33 = vld [vmem:[#allocation5 + $0x784] ss:$8 sps:$4 sm:$0xff]   ;;  %v5040_v34 = vld [vmem:[#allocation5 + $0x80] ss:$8 sps:$4 sm:$0xff]  }
  0x7b   :  { %3607 = vmatprep.subr.bf16.mxu0 %v5008_v13  ;;  %v5041_v35 = vld [vmem:[#allocation5 + $0x780] ss:$8 sps:$4 sm:$0xff]   ;;  %v5042_v36 = vld [vmem:[#allocation5 + $0x94] ss:$8 sps:$4 sm:$0xff]   ;;  %v5046_v38 = vld [vmem:[#allocation5 + $0x90] ss:$8 sps:$4 sm:$0xff]  }
  0x7c   :  { %v5044_v37 = vld [vmem:[#allocation5 + $0x794] ss:$8 sps:$4 sm:$0xff]   ;;  %v5047_v39 = vld [vmem:[#allocation5 + $0x790] ss:$8 sps:$4 sm:$0xff]   ;;  %v5048_v40 = vld [vmem:[#allocation5 + $0xa4] ss:$8 sps:$4 sm:$0xff]  }
  0x7d   :  { %3321 = vmatpush1.bf16.msra.mxu1 %v5010_v14  ;;  %v5050_v41 = vld [vmem:[#allocation5 + $0x7a4] ss:$8 sps:$4 sm:$0xff]   ;;  %v5052_v42 = vld [vmem:[#allocation5 + $0xa0] ss:$8 sps:$4 sm:$0xff]   ;;  %v5054_v44 = vld [vmem:[#allocation5 + $0xb4] ss:$8 sps:$4 sm:$0xff]  }
  0x7e   :  { %3608 = vmatpush1.bf16.msra.mxu0 %v5011_v15  ;;  %3322 = vmatprep.subr.bf16.mxu1 %v5012_v16  ;;  %v5053_v43 = vld [vmem:[#allocation5 + $0x7a0] ss:$8 sps:$4 sm:$0xff]   ;;  %v5056_v45 = vld [vmem:[#allocation5 + $0x7b4] ss:$8 sps:$4 sm:$0xff]   ;;  %v5058_v47 = vld [vmem:[#allocation5 + $0xb0] ss:$8 sps:$4 sm:$0xff]  }
  0x7f   :  { %3609 = vmatprep.subr.bf16.mxu0 %v5014_v17  ;;  %v102_v46 = vld [vmem:[#allocation2] sm:$0xff]  ;;  %v5059_v49 = vld [vmem:[#allocation5 + $0x7b0] ss:$8 sps:$4 sm:$0xff]   ;;  %v5066_v56 = vld [vmem:[#allocation5 + $0xd4] ss:$8 sps:$4 sm:$0xff]   ;;  %vm5991_vm0 = vmmov 0  }
  0x80   :  { %v4295_v48 = vcombine.high %v102_v46, %v102_v46  ;;  %v109_v50 = vld [vmem:[#allocation2 + $0x38] sm:$0xff]  ;;  %v5060_v51 = vld [vmem:[#allocation5 + $0xc4] ss:$8 sps:$4 sm:$0xff]   ;;  %v5064_v54 = vld [vmem:[#allocation5 + $0xc0] ss:$8 sps:$4 sm:$0xff]   ;;  %v4294_v6 = vcombine.low %v102_v46, %v102_v46  ;;  %vm4262_vm1 = vcmask 80896  }
  0x81   :  { %3323 = vmatpush1.bf16.msra.mxu1 %v5016_v18  ;;  %v5062_v52 = vld [vmem:[#allocation5 + $0x7c4] ss:$8 sps:$4 sm:$0xff]   ;;  %v4309_v53 = vcombine.high %v109_v50, %v109_v50  ;;  %v5065_v55 = vld [vmem:[#allocation5 + $0x7c0] ss:$8 sps:$4 sm:$0xff]   ;;  %v5068_v57 = vld [vmem:[#allocation5 + $0x7d4] ss:$8 sps:$4 sm:$0xff]   ;;  %v4308_v7 = vcombine.low %v109_v50, %v109_v50 }
  0x82   :  { %3610 = vmatpush1.bf16.msra.mxu0 %v5017_v19  ;;  %3324 = vmatprep.subr.bf16.mxu1 %v5018_v20  ;;  %v5070_v58 = vld [vmem:[#allocation5 + $0xd0] ss:$8 sps:$4 sm:$0xff]   ;;  %v5072_v60 = vld [vmem:[#allocation5 + $0xe4] ss:$8 sps:$4 sm:$0xff]   ;;  %v5076_v62 = vld [vmem:[#allocation5 + $0xe0] ss:$8 sps:$4 sm:$0xff]  }
  0x83   :  { %3611 = vmatprep.subr.bf16.mxu0 %v5020_v21  ;;  %3346 = vmatprep.mubr.bf16.mxu1 %v4295_v48  ;;  %v5071_v59 = vld [vmem:[#allocation5 + $0x7d0] ss:$8 sps:$4 sm:$0xff]   ;;  %v5074_v61 = vld [vmem:[#allocation5 + $0x7e4] ss:$8 sps:$4 sm:$0xff]   ;;  %v5077_v63 = vld [vmem:[#allocation5 + $0x7e0] ss:$8 sps:$4 sm:$0xff]  }
  0x84   :  { %3633 = vmatprep.mubr.bf16.mxu0 %v4309_v53  ;;  %v5078_v0 = vld [vmem:[#allocation5 + $0xf4] ss:$8 sps:$4 sm:$0xff]   ;;  %v5082_v2 = vld [vmem:[#allocation5 + $0xf0] ss:$8 sps:$4 sm:$0xff]   ;;  %v5088_v4 = vld [vmem:[#allocation5 + $0x104] ss:$8 sps:$4 sm:$0xff]  }
  0x85   :  { %3325 = vmatpush1.bf16.msra.mxu1 %v5022_v22  ;;  %v5080_v1 = vld [vmem:[#allocation5 + $0x7f4] ss:$8 sps:$4 sm:$0xff]   ;;  %v5083_v3 = vld [vmem:[#allocation5 + $0x7f0] ss:$8 sps:$4 sm:$0xff]   ;;  %v5093_v5 = vld [vmem:[#allocation5 + $0x804] ss:$8 sps:$4 sm:$0xff]  }
  0x86   :  { %3612 = vmatpush1.bf16.msra.mxu0 %v5023_v23  ;;  %3326 = vmatprep.subr.bf16.mxu1 %v5024_v24  ;;  %v5086_v8 = vld [vmem:[#allocation5 + $0x100] ss:$8 sps:$4 sm:$0xff]   ;;  %v5096_v10 = vld [vmem:[#allocation5 + $0x114] ss:$8 sps:$4 sm:$0xff]   ;;  %v5094_v12 = vld [vmem:[#allocation5 + $0x110] ss:$8 sps:$4 sm:$0xff]  }
  0x87   :  { %3613 = vmatprep.subr.bf16.mxu0 %v5026_v25  ;;  %v5091_v9 = vld [vmem:[#allocation5 + $0x800] ss:$8 sps:$4 sm:$0xff]   ;;  %v5099_v11 = vld [vmem:[#allocation5 + $0x814] ss:$8 sps:$4 sm:$0xff]   ;;  %v5097_v13 = vld [vmem:[#allocation5 + $0x810] ss:$8 sps:$4 sm:$0xff]  }
  0x88   :  { %v5102_v14 = vld [vmem:[#allocation5 + $0x124] ss:$8 sps:$4 sm:$0xff]   ;;  %v5100_v16 = vld [vmem:[#allocation5 + $0x120] ss:$8 sps:$4 sm:$0xff]   ;;  %v5108_v18 = vld [vmem:[#allocation5 + $0x134] ss:$8 sps:$4 sm:$0xff]  }
  0x89   :  { %3327 = vmatpush1.bf16.msra.mxu1 %v5028_v26  ;;  %v5105_v15 = vld [vmem:[#allocation5 + $0x824] ss:$8 sps:$4 sm:$0xff]   ;;  %v5103_v17 = vld [vmem:[#allocation5 + $0x820] ss:$8 sps:$4 sm:$0xff]   ;;  %v5111_v19 = vld [vmem:[#allocation5 + $0x834] ss:$8 sps:$4 sm:$0xff]  }
  0x8a   :  { %3614 = vmatpush1.bf16.msra.mxu0 %v5029_v27  ;;  %3328 = vmatprep.subr.bf16.mxu1 %v5030_v28  ;;  %v5106_v20 = vld [vmem:[#allocation5 + $0x130] ss:$8 sps:$4 sm:$0xff]   ;;  %v5114_v22 = vld [vmem:[#allocation5 + $0x144] ss:$8 sps:$4 sm:$0xff]   ;;  %v5112_v24 = vld [vmem:[#allocation5 + $0x140] ss:$8 sps:$4 sm:$0xff]  }
  0x8b   :  { %3615 = vmatprep.subr.bf16.mxu0 %v5032_v29  ;;  %v5109_v21 = vld [vmem:[#allocation5 + $0x830] ss:$8 sps:$4 sm:$0xff]   ;;  %v5117_v23 = vld [vmem:[#allocation5 + $0x844] ss:$8 sps:$4 sm:$0xff]   ;;  %v5115_v25 = vld [vmem:[#allocation5 + $0x840] ss:$8 sps:$4 sm:$0xff]  }
  0x8c   :  { %v5120_v26 = vld [vmem:[#allocation5 + $0x154] ss:$8 sps:$4 sm:$0xff]   ;;  %v5118_v28 = vld [vmem:[#allocation5 + $0x150] ss:$8 sps:$4 sm:$0xff]   ;;  %v5150_v50 = vld [vmem:[#allocation5 + $0x1a4] ss:$8 sps:$4 sm:$0xff]  }
  0x8d   :  { %3329 = vmatpush1.bf16.msra.mxu1 %v5034_v30  ;;  %v5123_v27 = vld [vmem:[#allocation5 + $0x854] ss:$8 sps:$4 sm:$0xff]   ;;  %v5121_v29 = vld [vmem:[#allocation5 + $0x850] ss:$8 sps:$4 sm:$0xff]   ;;  %v5126_v30 = vld [vmem:[#allocation5 + $0x164] ss:$8 sps:$4 sm:$0xff]  }
  0x8e   :  { %3616 = vmatpush1.bf16.msra.mxu0 %v5035_v31  ;;  %3330 = vmatprep.subr.bf16.mxu1 %v5036_v32  ;;  %v5129_v31 = vld [vmem:[#allocation5 + $0x864] ss:$8 sps:$4 sm:$0xff]   ;;  %v5144_v46 = vld [vmem:[#allocation5 + $0x194] ss:$8 sps:$4 sm:$0xff]   ;;  %v5142_v48 = vld [vmem:[#allocation5 + $0x190] ss:$8 sps:$4 sm:$0xff]  }
  0x8f   :  { %3617 = vmatprep.subr.bf16.mxu0 %v5038_v33  ;;  %v6105_v32 = vld [vmem:[#allocation2 + $0x8] sm:$0xff] }
  0x90   :  { %v5124_v33 = vld [vmem:[#allocation5 + $0x160] ss:$8 sps:$4 sm:$0xff]  }
  0x91   :  { %3331 = vmatpush1.bf16.msra.mxu1 %v5040_v34  ;;  %v5127_v34 = vld [vmem:[#allocation5 + $0x860] ss:$8 sps:$4 sm:$0xff]  }
  0x92   :  { %3618 = vmatpush1.bf16.msra.mxu0 %v5041_v35  ;;  %3332 = vmatprep.subr.bf16.mxu1 %v5042_v36  ;;  %v4297_v35 = vcombine.high %v6105_v32, %v6105_v32  ;;  %v6109_v36 = vld [vmem:[#allocation2 + $0x40] sm:$0xff] }
  0x93   :  { %3619 = vmatprep.subr.bf16.mxu0 %v5044_v37  ;;  %v5132_v37 = vld [vmem:[#allocation5 + $0x174] ss:$8 sps:$4 sm:$0xff]   ;;  %v5151_v53 = vld [vmem:[#allocation5 + $0x8a0] ss:$8 sps:$4 sm:$0xff]  }
  0x95   :  { %3333 = vmatpush1.bf16.msra.mxu1 %v5046_v38  ;;  %v4311_v38 = vcombine.high %v6109_v36, %v6109_v36 }
  0x96   :  { %3620 = vmatpush1.bf16.msra.mxu0 %v5047_v39  ;;  %3334 = vmatprep.subr.bf16.mxu1 %v5048_v40  ;;  %v5135_v39 = vld [vmem:[#allocation5 + $0x874] ss:$8 sps:$4 sm:$0xff]   ;;  %v5130_v40 = vld [vmem:[#allocation5 + $0x170] ss:$8 sps:$4 sm:$0xff]  }
  0x97   :  { %3621 = vmatprep.subr.bf16.mxu0 %v5050_v41  ;;  %v5133_v41 = vld [vmem:[#allocation5 + $0x870] ss:$8 sps:$4 sm:$0xff]  }
  0x99   :  { %3335 = vmatpush1.bf16.msra.mxu1 %v5052_v42  ;;  %v5138_v42 = vld [vmem:[#allocation5 + $0x184] ss:$8 sps:$4 sm:$0xff]  }
  0x9a   :  { %3622 = vmatpush1.bf16.msra.mxu0 %v5053_v43  ;;  %3336 = vmatprep.subr.bf16.mxu1 %v5054_v44  ;;  %v5141_v43 = vld [vmem:[#allocation5 + $0x884] ss:$8 sps:$4 sm:$0xff]   ;;  %v5136_v44 = vld [vmem:[#allocation5 + $0x180] ss:$8 sps:$4 sm:$0xff]  }
  0x9b   :  { %3623 = vmatprep.subr.bf16.mxu0 %v5056_v45  ;;  %v5139_v45 = vld [vmem:[#allocation5 + $0x880] ss:$8 sps:$4 sm:$0xff]  }
  0x9d   :  { %3337 = vmatpush1.bf16.msra.mxu1 %v5058_v47  ;;  %v5147_v47 = vld [vmem:[#allocation5 + $0x894] ss:$8 sps:$4 sm:$0xff]  }
  0x9e   :  { %3624 = vmatpush1.bf16.msra.mxu0 %v5059_v49  ;;  %3338 = vmatprep.subr.bf16.mxu1 %v5060_v51  ;;  %v5145_v49 = vld [vmem:[#allocation5 + $0x890] ss:$8 sps:$4 sm:$0xff]   ;;  %v5153_v51 = vld [vmem:[#allocation5 + $0x8a4] ss:$8 sps:$4 sm:$0xff]  }
  0x9f   :  { %3625 = vmatprep.subr.bf16.mxu0 %v5062_v52  ;;  %v5148_v52 = vld [vmem:[#allocation5 + $0x1a0] ss:$8 sps:$4 sm:$0xff]  }
  0xa1   :  { %3339 = vmatpush1.bf16.msra.mxu1 %v5064_v54  ;;  %v5156_v54 = vld [vmem:[#allocation5 + $0x1b4] ss:$8 sps:$4 sm:$0xff]  }
  0xa2   :  { %3626 = vmatpush1.bf16.msra.mxu0 %v5065_v55  ;;  %3340 = vmatprep.subr.bf16.mxu1 %v5066_v56  ;;  %v5159_v55 = vld [vmem:[#allocation5 + $0x8b4] ss:$8 sps:$4 sm:$0xff]   ;;  %v5154_v56 = vld [vmem:[#allocation5 + $0x1b0] ss:$8 sps:$4 sm:$0xff]  }
  0xa3   :  { %3627 = vmatprep.subr.bf16.mxu0 %v5068_v57  ;;  %v5157_v57 = vld [vmem:[#allocation5 + $0x8b0] ss:$8 sps:$4 sm:$0xff]  }
  0xa5   :  { %3341 = vmatpush1.bf16.msra.mxu1 %v5070_v58  ;;  %v5162_v58 = vld [vmem:[#allocation5 + $0x1c4] ss:$8 sps:$4 sm:$0xff]  }
  0xa6   :  { %3628 = vmatpush1.bf16.msra.mxu0 %v5071_v59  ;;  %3342 = vmatprep.subr.bf16.mxu1 %v5072_v60  ;;  %v5165_v59 = vld [vmem:[#allocation5 + $0x8c4] ss:$8 sps:$4 sm:$0xff]   ;;  %v5160_v60 = vld [vmem:[#allocation5 + $0x1c0] ss:$8 sps:$4 sm:$0xff]  }
  0xa7   :  { %3629 = vmatprep.subr.bf16.mxu0 %v5074_v61  ;;  %v5163_v61 = vld [vmem:[#allocation5 + $0x8c0] ss:$8 sps:$4 sm:$0xff]  }
  0xa9   :  { %3343 = vmatpush1.bf16.msra.mxu1 %v5076_v62  ;;  %v5168_v62 = vld [vmem:[#allocation5 + $0x1d4] ss:$8 sps:$4 sm:$0xff]  }
  0xaa   :  { %3630 = vmatpush1.bf16.msra.mxu0 %v5077_v63  ;;  %3344 = vmatprep.subr.bf16.mxu1 %v5078_v0  ;;  %v5171_v63 = vld [vmem:[#allocation5 + $0x8d4] ss:$8 sps:$4 sm:$0xff]   ;;  %v5166_v0 = vld [vmem:[#allocation5 + $0x1d0] ss:$8 sps:$4 sm:$0xff]  }
  0xab   :  { %3631 = vmatprep.subr.bf16.mxu0 %v5080_v1  ;;  %v5169_v1 = vld [vmem:[#allocation5 + $0x8d0] ss:$8 sps:$4 sm:$0xff]  }
  0xad   :  { %3345 = vmatpush1.bf16.msra.mxu1 %v5082_v2  ;;  %v5174_v2 = vld [vmem:[#allocation5 + $0x1e4] ss:$8 sps:$4 sm:$0xff]  }
  0xae   :  { %3632 = vmatpush1.bf16.msra.mxu0 %v5083_v3  ;;  %3355 = vmatprep.subr.bf16.mxu1 %v5088_v4  ;;  %v5177_v3 = vld [vmem:[#allocation5 + $0x8e4] ss:$8 sps:$4 sm:$0xff]   ;;  %v5172_v4 = vld [vmem:[#allocation5 + $0x1e0] ss:$8 sps:$4 sm:$0xff]  }
  0xaf   :  { %3642 = vmatprep.subr.bf16.mxu0 %v5093_v5  ;;  %v5175_v5 = vld [vmem:[#allocation5 + $0x8e0] ss:$8 sps:$4 sm:$0xff]  }
  0xb0   :  { %3347 = vmatmul.mubr.bf16.vlgmr.msra.gmra.mrb[0].mxu1 %v4294_v6  ;;  %v5180_v6 = vld [vmem:[#allocation5 + $0x1f4] ss:$8 sps:$4 sm:$0xff]  }
  0xb1   :  { %3634 = vmatmul.mubr.bf16.vlgmr.msra.gmra.mrb[0].mxu0 %v4308_v7  ;;  %3356 = vmatpush1.bf16.msra.mxu1 %v5086_v8  ;;  %v5183_v7 = vld [vmem:[#allocation5 + $0x8f4] ss:$8 sps:$4 sm:$0xff]   ;;  %v5178_v8 = vld [vmem:[#allocation5 + $0x1f0] ss:$8 sps:$4 sm:$0xff]  }
  0xb2   :  { %3643 = vmatpush1.bf16.msra.mxu0 %v5091_v9  ;;  %3357 = vmatprep.subr.bf16.mxu1 %v5096_v10  ;;  %v5181_v9 = vld [vmem:[#allocation5 + $0x8f0] ss:$8 sps:$4 sm:$0xff]   ;;  %v5188_v10 = vld [vmem:[#allocation5 + $0x204] ss:$8 sps:$4 sm:$0xff]  }
  0xb3   :  { %3644 = vmatprep.subr.bf16.mxu0 %v5099_v11  ;;  %3387 = vmatprep.mubr.bf16.mxu1 %v4297_v35  ;;  %v5193_v11 = vld [vmem:[#allocation5 + $0x904] ss:$8 sps:$4 sm:$0xff]   ;;  %v5215_v35 = vld [vmem:[#allocation5 + $0x940] ss:$8 sps:$4 sm:$0xff]  }
  0xb4   :  { %3674 = vmatprep.mubr.bf16.mxu0 %v4311_v38  ;;  %v5218_v38 = vld [vmem:[#allocation5 + $0x250] ss:$8 sps:$4 sm:$0xff]  }
  0xb5   :  { %3358 = vmatpush1.bf16.msra.mxu1 %v5094_v12  ;;  %v4296_v12 = vcombine.low %v6105_v32, %v6105_v32  ;;  %v5214_v32 = vld [vmem:[#allocation5 + $0x244] ss:$8 sps:$4 sm:$0xff]  }
  0xb6   :  { %3645 = vmatpush1.bf16.msra.mxu0 %v5097_v13  ;;  %3359 = vmatprep.subr.bf16.mxu1 %v5102_v14  ;;  %v5186_v13 = vld [vmem:[#allocation5 + $0x200] ss:$8 sps:$4 sm:$0xff]   ;;  %v4310_v14 = vcombine.low %v6109_v36, %v6109_v36  ;;  %v5220_v36 = vld [vmem:[#allocation5 + $0x254] ss:$8 sps:$4 sm:$0xff]  }
  0xb7   :  { %3646 = vmatprep.subr.bf16.mxu0 %v5105_v15  ;;  %v5191_v15 = vld [vmem:[#allocation5 + $0x900] ss:$8 sps:$4 sm:$0xff]  }
  0xb9   :  { %3360 = vmatpush1.bf16.msra.mxu1 %v5100_v16  ;;  %v5196_v16 = vld [vmem:[#allocation5 + $0x214] ss:$8 sps:$4 sm:$0xff]  }
  0xba   :  { %3647 = vmatpush1.bf16.msra.mxu0 %v5103_v17  ;;  %3361 = vmatprep.subr.bf16.mxu1 %v5108_v18  ;;  %v5199_v17 = vld [vmem:[#allocation5 + $0x914] ss:$8 sps:$4 sm:$0xff]  }
  0xbb   :  { %3648 = vmatprep.subr.bf16.mxu0 %v5111_v19  ;;  %v6117_v18 = vld [vmem:[#allocation2 + $0x10] sm:$0xff] }
  0xbc   :  { %v4299_v19 = vcombine.high %v6117_v18, %v6117_v18 }
  0xbd   :  { %3362 = vmatpush1.bf16.msra.mxu1 %v5106_v20  ;;  %v6121_v20 = vld [vmem:[#allocation2 + $0x48] sm:$0xff] }
  0xbe   :  { %3649 = vmatpush1.bf16.msra.mxu0 %v5109_v21  ;;  %3363 = vmatprep.subr.bf16.mxu1 %v5114_v22  ;;  %v5194_v21 = vld [vmem:[#allocation5 + $0x210] ss:$8 sps:$4 sm:$0xff]  }
  0xbf   :  { %3650 = vmatprep.subr.bf16.mxu0 %v5117_v23  ;;  %v5197_v22 = vld [vmem:[#allocation5 + $0x910] ss:$8 sps:$4 sm:$0xff]   ;;  %v4313_v23 = vcombine.high %v6121_v20, %v6121_v20 }
  0xc1   :  { %3364 = vmatpush1.bf16.msra.mxu1 %v5112_v24  ;;  %v5202_v24 = vld [vmem:[#allocation5 + $0x224] ss:$8 sps:$4 sm:$0xff]  }
  0xc2   :  { %3651 = vmatpush1.bf16.msra.mxu0 %v5115_v25  ;;  %3365 = vmatprep.subr.bf16.mxu1 %v5120_v26  ;;  %v5205_v25 = vld [vmem:[#allocation5 + $0x924] ss:$8 sps:$4 sm:$0xff]   ;;  %v5200_v26 = vld [vmem:[#allocation5 + $0x220] ss:$8 sps:$4 sm:$0xff]  }
  0xc3   :  { %3652 = vmatprep.subr.bf16.mxu0 %v5123_v27  ;;  %v5203_v27 = vld [vmem:[#allocation5 + $0x920] ss:$8 sps:$4 sm:$0xff]  }
  0xc5   :  { %3366 = vmatpush1.bf16.msra.mxu1 %v5118_v28  ;;  %v5208_v28 = vld [vmem:[#allocation5 + $0x234] ss:$8 sps:$4 sm:$0xff]  }
  0xc6   :  { %3653 = vmatpush1.bf16.msra.mxu0 %v5121_v29  ;;  %3367 = vmatprep.subr.bf16.mxu1 %v5126_v30  ;;  %v5211_v29 = vld [vmem:[#allocation5 + $0x934] ss:$8 sps:$4 sm:$0xff]   ;;  %v5206_v30 = vld [vmem:[#allocation5 + $0x230] ss:$8 sps:$4 sm:$0xff]  }
  0xc7   :  { %3654 = vmatprep.subr.bf16.mxu0 %v5129_v31  ;;  %v5209_v31 = vld [vmem:[#allocation5 + $0x930] ss:$8 sps:$4 sm:$0xff]  }
  0xc9   :  { %3368 = vmatpush1.bf16.msra.mxu1 %v5124_v33  ;;  %v5217_v33 = vld [vmem:[#allocation5 + $0x944] ss:$8 sps:$4 sm:$0xff]  }
  0xca   :  { %3655 = vmatpush1.bf16.msra.mxu0 %v5127_v34  ;;  %3369 = vmatprep.subr.bf16.mxu1 %v5132_v37  ;;  %v5212_v34 = vld [vmem:[#allocation5 + $0x240] ss:$8 sps:$4 sm:$0xff]   ;;  %v5223_v37 = vld [vmem:[#allocation5 + $0x954] ss:$8 sps:$4 sm:$0xff]  }
  0xcb   :  { %3656 = vmatprep.subr.bf16.mxu0 %v5135_v39  ;;  %v5221_v39 = vld [vmem:[#allocation5 + $0x950] ss:$8 sps:$4 sm:$0xff]  }
  0xcd   :  { %3370 = vmatpush1.bf16.msra.mxu1 %v5130_v40  ;;  %v5226_v40 = vld [vmem:[#allocation5 + $0x264] ss:$8 sps:$4 sm:$0xff]  }
  0xce   :  { %3657 = vmatpush1.bf16.msra.mxu0 %v5133_v41  ;;  %3371 = vmatprep.subr.bf16.mxu1 %v5138_v42  ;;  %v5229_v41 = vld [vmem:[#allocation5 + $0x964] ss:$8 sps:$4 sm:$0xff]   ;;  %v5224_v42 = vld [vmem:[#allocation5 + $0x260] ss:$8 sps:$4 sm:$0xff]  }
  0xcf   :  { %3658 = vmatprep.subr.bf16.mxu0 %v5141_v43  ;;  %v5227_v43 = vld [vmem:[#allocation5 + $0x960] ss:$8 sps:$4 sm:$0xff]  }
  0xd1   :  { %3372 = vmatpush1.bf16.msra.mxu1 %v5136_v44  ;;  %v5232_v44 = vld [vmem:[#allocation5 + $0x274] ss:$8 sps:$4 sm:$0xff]  }
  0xd2   :  { %3659 = vmatpush1.bf16.msra.mxu0 %v5139_v45  ;;  %3373 = vmatprep.subr.bf16.mxu1 %v5144_v46  ;;  %v5235_v45 = vld [vmem:[#allocation5 + $0x974] ss:$8 sps:$4 sm:$0xff]   ;;  %v5230_v46 = vld [vmem:[#allocation5 + $0x270] ss:$8 sps:$4 sm:$0xff]  }
  0xd3   :  { %3660 = vmatprep.subr.bf16.mxu0 %v5147_v47  ;;  %v5233_v47 = vld [vmem:[#allocation5 + $0x970] ss:$8 sps:$4 sm:$0xff]  }
  0xd5   :  { %3374 = vmatpush1.bf16.msra.mxu1 %v5142_v48  ;;  %v5238_v48 = vld [vmem:[#allocation5 + $0x284] ss:$8 sps:$4 sm:$0xff]  }
  0xd6   :  { %3661 = vmatpush1.bf16.msra.mxu0 %v5145_v49  ;;  %3375 = vmatprep.subr.bf16.mxu1 %v5150_v50  ;;  %v5241_v49 = vld [vmem:[#allocation5 + $0x984] ss:$8 sps:$4 sm:$0xff]   ;;  %v5236_v50 = vld [vmem:[#allocation5 + $0x280] ss:$8 sps:$4 sm:$0xff]  }
  0xd7   :  { %3662 = vmatprep.subr.bf16.mxu0 %v5153_v51  ;;  %v5239_v51 = vld [vmem:[#allocation5 + $0x980] ss:$8 sps:$4 sm:$0xff]  }
  0xd9   :  { %3376 = vmatpush1.bf16.msra.mxu1 %v5148_v52  ;;  %v5244_v52 = vld [vmem:[#allocation5 + $0x294] ss:$8 sps:$4 sm:$0xff]  }
  0xda   :  { %3663 = vmatpush1.bf16.msra.mxu0 %v5151_v53  ;;  %3377 = vmatprep.subr.bf16.mxu1 %v5156_v54  ;;  %v5247_v53 = vld [vmem:[#allocation5 + $0x994] ss:$8 sps:$4 sm:$0xff]   ;;  %v5242_v54 = vld [vmem:[#allocation5 + $0x290] ss:$8 sps:$4 sm:$0xff]  }
  0xdb   :  { %3664 = vmatprep.subr.bf16.mxu0 %v5159_v55  ;;  %v5245_v55 = vld [vmem:[#allocation5 + $0x990] ss:$8 sps:$4 sm:$0xff]  }
  0xdd   :  { %3378 = vmatpush1.bf16.msra.mxu1 %v5154_v56  ;;  %v5250_v56 = vld [vmem:[#allocation5 + $0x2a4] ss:$8 sps:$4 sm:$0xff]  }
  0xde   :  { %3665 = vmatpush1.bf16.msra.mxu0 %v5157_v57  ;;  %3379 = vmatprep.subr.bf16.mxu1 %v5162_v58  ;;  %v5253_v57 = vld [vmem:[#allocation5 + $0x9a4] ss:$8 sps:$4 sm:$0xff]   ;;  %v5248_v58 = vld [vmem:[#allocation5 + $0x2a0] ss:$8 sps:$4 sm:$0xff]  }
  0xdf   :  { %3666 = vmatprep.subr.bf16.mxu0 %v5165_v59  ;;  %v5251_v59 = vld [vmem:[#allocation5 + $0x9a0] ss:$8 sps:$4 sm:$0xff]  }
  0xe1   :  { %3380 = vmatpush1.bf16.msra.mxu1 %v5160_v60  ;;  %v5256_v60 = vld [vmem:[#allocation5 + $0x2b4] ss:$8 sps:$4 sm:$0xff]  }
  0xe2   :  { %3667 = vmatpush1.bf16.msra.mxu0 %v5163_v61  ;;  %3381 = vmatprep.subr.bf16.mxu1 %v5168_v62  ;;  %v5259_v61 = vld [vmem:[#allocation5 + $0x9b4] ss:$8 sps:$4 sm:$0xff]   ;;  %v5254_v62 = vld [vmem:[#allocation5 + $0x2b0] ss:$8 sps:$4 sm:$0xff]  }
  0xe3   :  { %3668 = vmatprep.subr.bf16.mxu0 %v5171_v63  ;;  %v5257_v63 = vld [vmem:[#allocation5 + $0x9b0] ss:$8 sps:$4 sm:$0xff]  }
  0xe5   :  { %3382 = vmatpush1.bf16.msra.mxu1 %v5166_v0  ;;  %v5262_v0 = vld [vmem:[#allocation5 + $0x2c4] ss:$8 sps:$4 sm:$0xff]  }
  0xe6   :  { %3669 = vmatpush1.bf16.msra.mxu0 %v5169_v1  ;;  %3383 = vmatprep.subr.bf16.mxu1 %v5174_v2  ;;  %v5265_v1 = vld [vmem:[#allocation5 + $0x9c4] ss:$8 sps:$4 sm:$0xff]   ;;  %v5260_v2 = vld [vmem:[#allocation5 + $0x2c0] ss:$8 sps:$4 sm:$0xff]  }
  0xe7   :  { %3670 = vmatprep.subr.bf16.mxu0 %v5177_v3  ;;  %v5263_v3 = vld [vmem:[#allocation5 + $0x9c0] ss:$8 sps:$4 sm:$0xff]  }
  0xe9   :  { %3384 = vmatpush1.bf16.msra.mxu1 %v5172_v4  ;;  %v5268_v4 = vld [vmem:[#allocation5 + $0x2d4] ss:$8 sps:$4 sm:$0xff]  }
  0xea   :  { %3671 = vmatpush1.bf16.msra.mxu0 %v5175_v5  ;;  %3385 = vmatprep.subr.bf16.mxu1 %v5180_v6  ;;  %v5271_v5 = vld [vmem:[#allocation5 + $0x9d4] ss:$8 sps:$4 sm:$0xff]   ;;  %v5266_v6 = vld [vmem:[#allocation5 + $0x2d0] ss:$8 sps:$4 sm:$0xff]  }
  0xeb   :  { %3672 = vmatprep.subr.bf16.mxu0 %v5183_v7  ;;  %v5269_v7 = vld [vmem:[#allocation5 + $0x9d0] ss:$8 sps:$4 sm:$0xff]  }
  0xed   :  { %3386 = vmatpush1.bf16.msra.mxu1 %v5178_v8  ;;  %v5274_v8 = vld [vmem:[#allocation5 + $0x2e4] ss:$8 sps:$4 sm:$0xff]  }
  0xee   :  { %3673 = vmatpush1.bf16.msra.mxu0 %v5181_v9  ;;  %3396 = vmatprep.subr.bf16.mxu1 %v5188_v10  ;;  %v5277_v9 = vld [vmem:[#allocation5 + $0x9e4] ss:$8 sps:$4 sm:$0xff]   ;;  %v5272_v10 = vld [vmem:[#allocation5 + $0x2e0] ss:$8 sps:$4 sm:$0xff]  }
  0xef   :  { %3683 = vmatprep.subr.bf16.mxu0 %v5193_v11  ;;  %v5275_v11 = vld [vmem:[#allocation5 + $0x9e0] ss:$8 sps:$4 sm:$0xff]  }
  0xf0   :  { %3388 = vmatmul.mubr.bf16.vlgmr.msra.gmra.mrb[0].mxu1 %v4296_v12  ;;  %v5280_v12 = vld [vmem:[#allocation5 + $0x2f4] ss:$8 sps:$4 sm:$0xff]  }
  0xf1   :  { %3675 = vmatmul.mubr.bf16.vlgmr.msra.gmra.mrb[0].mxu0 %v4310_v14  ;;  %3397 = vmatpush1.bf16.msra.mxu1 %v5186_v13  ;;  %v5283_v13 = vld [vmem:[#allocation5 + $0x9f4] ss:$8 sps:$4 sm:$0xff]   ;;  %v5278_v14 = vld [vmem:[#allocation5 + $0x2f0] ss:$8 sps:$4 sm:$0xff]  }
  0xf2   :  { %3684 = vmatpush1.bf16.msra.mxu0 %v5191_v15  ;;  %3398 = vmatprep.subr.bf16.mxu1 %v5196_v16  ;;  %v5281_v15 = vld [vmem:[#allocation5 + $0x9f0] ss:$8 sps:$4 sm:$0xff]   ;;  %v5288_v16 = vld [vmem:[#allocation5 + $0x304] ss:$8 sps:$4 sm:$0xff]  }
  0xf3   :  { %3685 = vmatprep.subr.bf16.mxu0 %v5199_v17  ;;  %3428 = vmatprep.mubr.bf16.mxu1 %v4299_v19  ;;  %v5293_v17 = vld [vmem:[#allocation5 + $0xa04] ss:$8 sps:$4 sm:$0xff]   ;;  %v5286_v19 = vld [vmem:[#allocation5 + $0x300] ss:$8 sps:$4 sm:$0xff]  }
  0xf4   :  { %3715 = vmatprep.mubr.bf16.mxu0 %v4313_v23  ;;  %v4312_v23 = vcombine.low %v6121_v20, %v6121_v20  ;;  %v5297_v20 = vld [vmem:[#allocation5 + $0xa10] ss:$8 sps:$4 sm:$0xff]  }
  0xf5   :  { %3399 = vmatpush1.bf16.msra.mxu1 %v5194_v21  ;;  %v5291_v21 = vld [vmem:[#allocation5 + $0xa00] ss:$8 sps:$4 sm:$0xff]  }
  0xf6   :  { %3686 = vmatpush1.bf16.msra.mxu0 %v5197_v22  ;;  %3400 = vmatprep.subr.bf16.mxu1 %v5202_v24  ;;  %v4298_v22 = vcombine.low %v6117_v18, %v6117_v18  ;;  %v6129_v24 = vld [vmem:[#allocation2 + $0x18] sm:$0xff] }
  0xf7   :  { %3687 = vmatprep.subr.bf16.mxu0 %v5205_v25  ;;  %v6131_v25 = vld [vmem:[#allocation2 + $0x50] sm:$0xff] }
  0xf8   :  { %v5294_v18 = vld [vmem:[#allocation5 + $0x310] ss:$8 sps:$4 sm:$0xff]  }
  0xf9   :  { %3401 = vmatpush1.bf16.msra.mxu1 %v5200_v26  ;;  %v5296_v26 = vld [vmem:[#allocation5 + $0x314] ss:$8 sps:$4 sm:$0xff]  }
  0xfa   :  { %3688 = vmatpush1.bf16.msra.mxu0 %v5203_v27  ;;  %3402 = vmatprep.subr.bf16.mxu1 %v5208_v28  ;;  %v5299_v27 = vld [vmem:[#allocation5 + $0xa14] ss:$8 sps:$4 sm:$0xff]   ;;  %v4301_v28 = vcombine.high %v6129_v24, %v6129_v24 }
  0xfb   :  { %3689 = vmatprep.subr.bf16.mxu0 %v5211_v29  ;;  %v4315_v29 = vcombine.high %v6131_v25, %v6131_v25 }
  0xfd   :  { %3403 = vmatpush1.bf16.msra.mxu1 %v5206_v30  ;;  %v5302_v30 = vld [vmem:[#allocation5 + $0x324] ss:$8 sps:$4 sm:$0xff]  }
  0xfe   :  { %3690 = vmatpush1.bf16.msra.mxu0 %v5209_v31  ;;  %3404 = vmatprep.subr.bf16.mxu1 %v5214_v32  ;;  %v5305_v31 = vld [vmem:[#allocation5 + $0xa24] ss:$8 sps:$4 sm:$0xff]   ;;  %v5300_v32 = vld [vmem:[#allocation5 + $0x320] ss:$8 sps:$4 sm:$0xff]  }
  0xff   :  { %3691 = vmatprep.subr.bf16.mxu0 %v5217_v33  ;;  %v5303_v33 = vld [vmem:[#allocation5 + $0xa20] ss:$8 sps:$4 sm:$0xff]  }
 0x101   :  { %3405 = vmatpush1.bf16.msra.mxu1 %v5212_v34  ;;  %v5308_v34 = vld [vmem:[#allocation5 + $0x334] ss:$8 sps:$4 sm:$0xff]  }
 0x102   :  { %3692 = vmatpush1.bf16.msra.mxu0 %v5215_v35  ;;  %3406 = vmatprep.subr.bf16.mxu1 %v5220_v36  ;;  %v5311_v35 = vld [vmem:[#allocation5 + $0xa34] ss:$8 sps:$4 sm:$0xff]   ;;  %v5306_v36 = vld [vmem:[#allocation5 + $0x330] ss:$8 sps:$4 sm:$0xff]  }
 0x103   :  { %3693 = vmatprep.subr.bf16.mxu0 %v5223_v37  ;;  %v5309_v37 = vld [vmem:[#allocation5 + $0xa30] ss:$8 sps:$4 sm:$0xff]  }
 0x105   :  { %3407 = vmatpush1.bf16.msra.mxu1 %v5218_v38  ;;  %v5314_v38 = vld [vmem:[#allocation5 + $0x344] ss:$8 sps:$4 sm:$0xff]  }
 0x106   :  { %3694 = vmatpush1.bf16.msra.mxu0 %v5221_v39  ;;  %3408 = vmatprep.subr.bf16.mxu1 %v5226_v40  ;;  %v5317_v39 = vld [vmem:[#allocation5 + $0xa44] ss:$8 sps:$4 sm:$0xff]   ;;  %v5312_v40 = vld [vmem:[#allocation5 + $0x340] ss:$8 sps:$4 sm:$0xff]  }
 0x107   :  { %3695 = vmatprep.subr.bf16.mxu0 %v5229_v41  ;;  %v5315_v41 = vld [vmem:[#allocation5 + $0xa40] ss:$8 sps:$4 sm:$0xff]  }
 0x109   :  { %3409 = vmatpush1.bf16.msra.mxu1 %v5224_v42  ;;  %v5320_v42 = vld [vmem:[#allocation5 + $0x354] ss:$8 sps:$4 sm:$0xff]  }
 0x10a   :  { %3696 = vmatpush1.bf16.msra.mxu0 %v5227_v43  ;;  %3410 = vmatprep.subr.bf16.mxu1 %v5232_v44  ;;  %v5323_v43 = vld [vmem:[#allocation5 + $0xa54] ss:$8 sps:$4 sm:$0xff]   ;;  %v5318_v44 = vld [vmem:[#allocation5 + $0x350] ss:$8 sps:$4 sm:$0xff]  }
 0x10b   :  { %3697 = vmatprep.subr.bf16.mxu0 %v5235_v45  ;;  %v5321_v45 = vld [vmem:[#allocation5 + $0xa50] ss:$8 sps:$4 sm:$0xff]  }
 0x10d   :  { %3411 = vmatpush1.bf16.msra.mxu1 %v5230_v46  ;;  %v5326_v46 = vld [vmem:[#allocation5 + $0x364] ss:$8 sps:$4 sm:$0xff]  }
 0x10e   :  { %3698 = vmatpush1.bf16.msra.mxu0 %v5233_v47  ;;  %3412 = vmatprep.subr.bf16.mxu1 %v5238_v48  ;;  %v5329_v47 = vld [vmem:[#allocation5 + $0xa64] ss:$8 sps:$4 sm:$0xff]   ;;  %v5324_v48 = vld [vmem:[#allocation5 + $0x360] ss:$8 sps:$4 sm:$0xff]  }
 0x10f   :  { %3699 = vmatprep.subr.bf16.mxu0 %v5241_v49  ;;  %v5327_v49 = vld [vmem:[#allocation5 + $0xa60] ss:$8 sps:$4 sm:$0xff]  }
 0x111   :  { %3413 = vmatpush1.bf16.msra.mxu1 %v5236_v50  ;;  %v5332_v50 = vld [vmem:[#allocation5 + $0x374] ss:$8 sps:$4 sm:$0xff]  }
 0x112   :  { %3700 = vmatpush1.bf16.msra.mxu0 %v5239_v51  ;;  %3414 = vmatprep.subr.bf16.mxu1 %v5244_v52  ;;  %v5335_v51 = vld [vmem:[#allocation5 + $0xa74] ss:$8 sps:$4 sm:$0xff]   ;;  %v5330_v52 = vld [vmem:[#allocation5 + $0x370] ss:$8 sps:$4 sm:$0xff]  }
 0x113   :  { %3701 = vmatprep.subr.bf16.mxu0 %v5247_v53  ;;  %v5333_v53 = vld [vmem:[#allocation5 + $0xa70] ss:$8 sps:$4 sm:$0xff]  }
 0x115   :  { %3415 = vmatpush1.bf16.msra.mxu1 %v5242_v54  ;;  %v5338_v54 = vld [vmem:[#allocation5 + $0x384] ss:$8 sps:$4 sm:$0xff]  }
 0x116   :  { %3702 = vmatpush1.bf16.msra.mxu0 %v5245_v55  ;;  %3416 = vmatprep.subr.bf16.mxu1 %v5250_v56  ;;  %v5341_v55 = vld [vmem:[#allocation5 + $0xa84] ss:$8 sps:$4 sm:$0xff]   ;;  %v5336_v56 = vld [vmem:[#allocation5 + $0x380] ss:$8 sps:$4 sm:$0xff]  }
 0x117   :  { %3703 = vmatprep.subr.bf16.mxu0 %v5253_v57  ;;  %v5339_v57 = vld [vmem:[#allocation5 + $0xa80] ss:$8 sps:$4 sm:$0xff]  }
 0x119   :  { %3417 = vmatpush1.bf16.msra.mxu1 %v5248_v58  ;;  %v5344_v58 = vld [vmem:[#allocation5 + $0x394] ss:$8 sps:$4 sm:$0xff]  }
 0x11a   :  { %3704 = vmatpush1.bf16.msra.mxu0 %v5251_v59  ;;  %3418 = vmatprep.subr.bf16.mxu1 %v5256_v60  ;;  %v5347_v59 = vld [vmem:[#allocation5 + $0xa94] ss:$8 sps:$4 sm:$0xff]   ;;  %v5342_v60 = vld [vmem:[#allocation5 + $0x390] ss:$8 sps:$4 sm:$0xff]  }
 0x11b   :  { %3705 = vmatprep.subr.bf16.mxu0 %v5259_v61  ;;  %v5345_v61 = vld [vmem:[#allocation5 + $0xa90] ss:$8 sps:$4 sm:$0xff]  }
 0x11d   :  { %3419 = vmatpush1.bf16.msra.mxu1 %v5254_v62  ;;  %v5350_v62 = vld [vmem:[#allocation5 + $0x3a4] ss:$8 sps:$4 sm:$0xff]  }
 0x11e   :  { %3706 = vmatpush1.bf16.msra.mxu0 %v5257_v63  ;;  %3420 = vmatprep.subr.bf16.mxu1 %v5262_v0  ;;  %v5353_v63 = vld [vmem:[#allocation5 + $0xaa4] ss:$8 sps:$4 sm:$0xff]   ;;  %v5348_v0 = vld [vmem:[#allocation5 + $0x3a0] ss:$8 sps:$4 sm:$0xff]  }
 0x11f   :  { %3707 = vmatprep.subr.bf16.mxu0 %v5265_v1  ;;  %v5351_v1 = vld [vmem:[#allocation5 + $0xaa0] ss:$8 sps:$4 sm:$0xff]  }
 0x121   :  { %3421 = vmatpush1.bf16.msra.mxu1 %v5260_v2  ;;  %v5356_v2 = vld [vmem:[#allocation5 + $0x3b4] ss:$8 sps:$4 sm:$0xff]  }
 0x122   :  { %3708 = vmatpush1.bf16.msra.mxu0 %v5263_v3  ;;  %3422 = vmatprep.subr.bf16.mxu1 %v5268_v4  ;;  %v5359_v3 = vld [vmem:[#allocation5 + $0xab4] ss:$8 sps:$4 sm:$0xff]   ;;  %v5354_v4 = vld [vmem:[#allocation5 + $0x3b0] ss:$8 sps:$4 sm:$0xff]  }
 0x123   :  { %3709 = vmatprep.subr.bf16.mxu0 %v5271_v5  ;;  %v5357_v5 = vld [vmem:[#allocation5 + $0xab0] ss:$8 sps:$4 sm:$0xff]  }
 0x125   :  { %3423 = vmatpush1.bf16.msra.mxu1 %v5266_v6  ;;  %v5362_v6 = vld [vmem:[#allocation5 + $0x3c4] ss:$8 sps:$4 sm:$0xff]  }
 0x126   :  { %3710 = vmatpush1.bf16.msra.mxu0 %v5269_v7  ;;  %3424 = vmatprep.subr.bf16.mxu1 %v5274_v8  ;;  %v5365_v7 = vld [vmem:[#allocation5 + $0xac4] ss:$8 sps:$4 sm:$0xff]   ;;  %v5360_v8 = vld [vmem:[#allocation5 + $0x3c0] ss:$8 sps:$4 sm:$0xff]  }
 0x127   :  { %3711 = vmatprep.subr.bf16.mxu0 %v5277_v9  ;;  %v5363_v9 = vld [vmem:[#allocation5 + $0xac0] ss:$8 sps:$4 sm:$0xff]  }
 0x129   :  { %3425 = vmatpush1.bf16.msra.mxu1 %v5272_v10  ;;  %v5368_v10 = vld [vmem:[#allocation5 + $0x3d4] ss:$8 sps:$4 sm:$0xff]  }
 0x12a   :  { %3712 = vmatpush1.bf16.msra.mxu0 %v5275_v11  ;;  %3426 = vmatprep.subr.bf16.mxu1 %v5280_v12  ;;  %v5371_v11 = vld [vmem:[#allocation5 + $0xad4] ss:$8 sps:$4 sm:$0xff]   ;;  %v5366_v12 = vld [vmem:[#allocation5 + $0x3d0] ss:$8 sps:$4 sm:$0xff]  }
 0x12b   :  { %3713 = vmatprep.subr.bf16.mxu0 %v5283_v13  ;;  %v5369_v13 = vld [vmem:[#allocation5 + $0xad0] ss:$8 sps:$4 sm:$0xff]  }
 0x12d   :  { %3427 = vmatpush1.bf16.msra.mxu1 %v5278_v14  ;;  %v5374_v14 = vld [vmem:[#allocation5 + $0x3e4] ss:$8 sps:$4 sm:$0xff]  }
 0x12e   :  { %3714 = vmatpush1.bf16.msra.mxu0 %v5281_v15  ;;  %3437 = vmatprep.subr.bf16.mxu1 %v5288_v16  ;;  %v5377_v15 = vld [vmem:[#allocation5 + $0xae4] ss:$8 sps:$4 sm:$0xff]   ;;  %v5372_v16 = vld [vmem:[#allocation5 + $0x3e0] ss:$8 sps:$4 sm:$0xff]  }
 0x12f   :  { %3724 = vmatprep.subr.bf16.mxu0 %v5293_v17  ;;  %v5375_v17 = vld [vmem:[#allocation5 + $0xae0] ss:$8 sps:$4 sm:$0xff]  }
 0x130   :  { %3429 = vmatmul.mubr.bf16.vlgmr.msra.gmra.mrb[0].mxu1 %v4298_v22  ;;  %v5378_v22 = vld [vmem:[#allocation5 + $0x3f0] ss:$8 sps:$4 sm:$0xff]  }
 0x131   :  { %3716 = vmatmul.mubr.bf16.vlgmr.msra.gmra.mrb[0].mxu0 %v4312_v23  ;;  %3438 = vmatpush1.bf16.msra.mxu1 %v5286_v19  ;;  %v5380_v19 = vld [vmem:[#allocation5 + $0x3f4] ss:$8 sps:$4 sm:$0xff]   ;;  %v5381_v23 = vld [vmem:[#allocation5 + $0xaf0] ss:$8 sps:$4 sm:$0xff]  }
 0x132   :  { %3725 = vmatpush1.bf16.msra.mxu0 %v5291_v21  ;;  %3439 = vmatprep.subr.bf16.mxu1 %v5296_v26  ;;  %v5383_v21 = vld [vmem:[#allocation5 + $0xaf4] ss:$8 sps:$4 sm:$0xff]   ;;  %v5388_v26 = vld [vmem:[#allocation5 + $0x404] ss:$8 sps:$4 sm:$0xff]  }
 0x133   :  { %3726 = vmatprep.subr.bf16.mxu0 %v5299_v27  ;;  %3469 = vmatprep.mubr.bf16.mxu1 %v4301_v28  ;;  %v5393_v27 = vld [vmem:[#allocation5 + $0xb04] ss:$8 sps:$4 sm:$0xff]  }
 0x134   :  { %3756 = vmatprep.mubr.bf16.mxu0 %v4315_v29  ;;  %v6137_v28 = vld [vmem:[#allocation2 + $0x20] sm:$0xff]  ;;  %v4300_v29 = vcombine.low %v6129_v24, %v6129_v24  ;;  %v5394_v24 = vld [vmem:[#allocation5 + $0x410] ss:$8 sps:$4 sm:$0xff]  }
 0x135   :  { %3440 = vmatpush1.bf16.msra.mxu1 %v5294_v18  ;;  %v4314_v18 = vcombine.low %v6131_v25, %v6131_v25  ;;  %v5397_v25 = vld [vmem:[#allocation5 + $0xb10] ss:$8 sps:$4 sm:$0xff]  }
 0x136   :  { %3727 = vmatpush1.bf16.msra.mxu0 %v5297_v20  ;;  %3441 = vmatprep.subr.bf16.mxu1 %v5302_v30  ;;  %v6143_v20 = vld [vmem:[#allocation2 + $0x58] sm:$0xff]  ;;  %v5386_v30 = vld [vmem:[#allocation5 + $0x400] ss:$8 sps:$4 sm:$0xff]  }
 0x137   :  { %3728 = vmatprep.subr.bf16.mxu0 %v5305_v31  ;;  %v5391_v31 = vld [vmem:[#allocation5 + $0xb00] ss:$8 sps:$4 sm:$0xff]  }
 0x139   :  { %3442 = vmatpush1.bf16.msra.mxu1 %v5300_v32  ;;  %v5396_v32 = vld [vmem:[#allocation5 + $0x414] ss:$8 sps:$4 sm:$0xff]  }
 0x13a   :  { %3729 = vmatpush1.bf16.msra.mxu0 %v5303_v33  ;;  %3443 = vmatprep.subr.bf16.mxu1 %v5308_v34  ;;  %v5399_v33 = vld [vmem:[#allocation5 + $0xb14] ss:$8 sps:$4 sm:$0xff]   ;;  %v4303_v34 = vcombine.high %v6137_v28, %v6137_v28 }
 0x13b   :  { %3730 = vmatprep.subr.bf16.mxu0 %v5311_v35  ;;  %v4317_v35 = vcombine.high %v6143_v20, %v6143_v20 }
 0x13d   :  { %3444 = vmatpush1.bf16.msra.mxu1 %v5306_v36  ;;  %v5402_v36 = vld [vmem:[#allocation5 + $0x424] ss:$8 sps:$4 sm:$0xff]  }
 0x13e   :  { %3731 = vmatpush1.bf16.msra.mxu0 %v5309_v37  ;;  %3445 = vmatprep.subr.bf16.mxu1 %v5314_v38  ;;  %v5405_v37 = vld [vmem:[#allocation5 + $0xb24] ss:$8 sps:$4 sm:$0xff]   ;;  %v5400_v38 = vld [vmem:[#allocation5 + $0x420] ss:$8 sps:$4 sm:$0xff]  }
 0x13f   :  { %3732 = vmatprep.subr.bf16.mxu0 %v5317_v39  ;;  %v5403_v39 = vld [vmem:[#allocation5 + $0xb20] ss:$8 sps:$4 sm:$0xff]  }
 0x141   :  { %3446 = vmatpush1.bf16.msra.mxu1 %v5312_v40  ;;  %v5408_v40 = vld [vmem:[#allocation5 + $0x434] ss:$8 sps:$4 sm:$0xff]  }
 0x142   :  { %3733 = vmatpush1.bf16.msra.mxu0 %v5315_v41  ;;  %3447 = vmatprep.subr.bf16.mxu1 %v5320_v42  ;;  %v5411_v41 = vld [vmem:[#allocation5 + $0xb34] ss:$8 sps:$4 sm:$0xff]   ;;  %v5406_v42 = vld [vmem:[#allocation5 + $0x430] ss:$8 sps:$4 sm:$0xff]  }
 0x143   :  { %3734 = vmatprep.subr.bf16.mxu0 %v5323_v43  ;;  %v5409_v43 = vld [vmem:[#allocation5 + $0xb30] ss:$8 sps:$4 sm:$0xff]  }
 0x145   :  { %3448 = vmatpush1.bf16.msra.mxu1 %v5318_v44  ;;  %v5414_v44 = vld [vmem:[#allocation5 + $0x444] ss:$8 sps:$4 sm:$0xff]  }
 0x146   :  { %3735 = vmatpush1.bf16.msra.mxu0 %v5321_v45  ;;  %3449 = vmatprep.subr.bf16.mxu1 %v5326_v46  ;;  %v5417_v45 = vld [vmem:[#allocation5 + $0xb44] ss:$8 sps:$4 sm:$0xff]   ;;  %v5412_v46 = vld [vmem:[#allocation5 + $0x440] ss:$8 sps:$4 sm:$0xff]  }
 0x147   :  { %3736 = vmatprep.subr.bf16.mxu0 %v5329_v47  ;;  %v5415_v47 = vld [vmem:[#allocation5 + $0xb40] ss:$8 sps:$4 sm:$0xff]  }
 0x149   :  { %3450 = vmatpush1.bf16.msra.mxu1 %v5324_v48  ;;  %v5420_v48 = vld [vmem:[#allocation5 + $0x454] ss:$8 sps:$4 sm:$0xff]  }
 0x14a   :  { %3737 = vmatpush1.bf16.msra.mxu0 %v5327_v49  ;;  %3451 = vmatprep.subr.bf16.mxu1 %v5332_v50  ;;  %v5423_v49 = vld [vmem:[#allocation5 + $0xb54] ss:$8 sps:$4 sm:$0xff]   ;;  %v5418_v50 = vld [vmem:[#allocation5 + $0x450] ss:$8 sps:$4 sm:$0xff]  }
 0x14b   :  { %3738 = vmatprep.subr.bf16.mxu0 %v5335_v51  ;;  %v5421_v51 = vld [vmem:[#allocation5 + $0xb50] ss:$8 sps:$4 sm:$0xff]  }
 0x14d   :  { %3452 = vmatpush1.bf16.msra.mxu1 %v5330_v52  ;;  %v5426_v52 = vld [vmem:[#allocation5 + $0x464] ss:$8 sps:$4 sm:$0xff]  }
 0x14e   :  { %3739 = vmatpush1.bf16.msra.mxu0 %v5333_v53  ;;  %3453 = vmatprep.subr.bf16.mxu1 %v5338_v54  ;;  %v5429_v53 = vld [vmem:[#allocation5 + $0xb64] ss:$8 sps:$4 sm:$0xff]   ;;  %v5424_v54 = vld [vmem:[#allocation5 + $0x460] ss:$8 sps:$4 sm:$0xff]  }
 0x14f   :  { %3740 = vmatprep.subr.bf16.mxu0 %v5341_v55  ;;  %v5427_v55 = vld [vmem:[#allocation5 + $0xb60] ss:$8 sps:$4 sm:$0xff]  }
 0x151   :  { %3454 = vmatpush1.bf16.msra.mxu1 %v5336_v56  ;;  %v5432_v56 = vld [vmem:[#allocation5 + $0x474] ss:$8 sps:$4 sm:$0xff]  }
 0x152   :  { %3741 = vmatpush1.bf16.msra.mxu0 %v5339_v57  ;;  %3455 = vmatprep.subr.bf16.mxu1 %v5344_v58  ;;  %v5435_v57 = vld [vmem:[#allocation5 + $0xb74] ss:$8 sps:$4 sm:$0xff]   ;;  %v5430_v58 = vld [vmem:[#allocation5 + $0x470] ss:$8 sps:$4 sm:$0xff]  }
 0x153   :  { %3742 = vmatprep.subr.bf16.mxu0 %v5347_v59  ;;  %v5433_v59 = vld [vmem:[#allocation5 + $0xb70] ss:$8 sps:$4 sm:$0xff]  }
 0x155   :  { %3456 = vmatpush1.bf16.msra.mxu1 %v5342_v60  ;;  %v5438_v60 = vld [vmem:[#allocation5 + $0x484] ss:$8 sps:$4 sm:$0xff]  }
 0x156   :  { %3743 = vmatpush1.bf16.msra.mxu0 %v5345_v61  ;;  %3457 = vmatprep.subr.bf16.mxu1 %v5350_v62  ;;  %v5441_v61 = vld [vmem:[#allocation5 + $0xb84] ss:$8 sps:$4 sm:$0xff]   ;;  %v5436_v62 = vld [vmem:[#allocation5 + $0x480] ss:$8 sps:$4 sm:$0xff]  }
 0x157   :  { %3744 = vmatprep.subr.bf16.mxu0 %v5353_v63  ;;  %v5439_v63 = vld [vmem:[#allocation5 + $0xb80] ss:$8 sps:$4 sm:$0xff]  }
 0x159   :  { %3458 = vmatpush1.bf16.msra.mxu1 %v5348_v0  ;;  %v5444_v0 = vld [vmem:[#allocation5 + $0x494] ss:$8 sps:$4 sm:$0xff]  }
 0x15a   :  { %3745 = vmatpush1.bf16.msra.mxu0 %v5351_v1  ;;  %3459 = vmatprep.subr.bf16.mxu1 %v5356_v2  ;;  %v5447_v1 = vld [vmem:[#allocation5 + $0xb94] ss:$8 sps:$4 sm:$0xff]   ;;  %v5442_v2 = vld [vmem:[#allocation5 + $0x490] ss:$8 sps:$4 sm:$0xff]  }
 0x15b   :  { %3746 = vmatprep.subr.bf16.mxu0 %v5359_v3  ;;  %v5445_v3 = vld [vmem:[#allocation5 + $0xb90] ss:$8 sps:$4 sm:$0xff]  }
 0x15d   :  { %3460 = vmatpush1.bf16.msra.mxu1 %v5354_v4  ;;  %v5450_v4 = vld [vmem:[#allocation5 + $0x4a4] ss:$8 sps:$4 sm:$0xff]  }
 0x15e   :  { %3747 = vmatpush1.bf16.msra.mxu0 %v5357_v5  ;;  %3461 = vmatprep.subr.bf16.mxu1 %v5362_v6  ;;  %v5453_v5 = vld [vmem:[#allocation5 + $0xba4] ss:$8 sps:$4 sm:$0xff]   ;;  %v5448_v6 = vld [vmem:[#allocation5 + $0x4a0] ss:$8 sps:$4 sm:$0xff]  }
 0x15f   :  { %3748 = vmatprep.subr.bf16.mxu0 %v5365_v7  ;;  %v5451_v7 = vld [vmem:[#allocation5 + $0xba0] ss:$8 sps:$4 sm:$0xff]  }
 0x161   :  { %3462 = vmatpush1.bf16.msra.mxu1 %v5360_v8  ;;  %v5456_v8 = vld [vmem:[#allocation5 + $0x4b4] ss:$8 sps:$4 sm:$0xff]  }
 0x162   :  { %3749 = vmatpush1.bf16.msra.mxu0 %v5363_v9  ;;  %3463 = vmatprep.subr.bf16.mxu1 %v5368_v10  ;;  %v5459_v9 = vld [vmem:[#allocation5 + $0xbb4] ss:$8 sps:$4 sm:$0xff]   ;;  %v5454_v10 = vld [vmem:[#allocation5 + $0x4b0] ss:$8 sps:$4 sm:$0xff]  }
 0x163   :  { %3750 = vmatprep.subr.bf16.mxu0 %v5371_v11  ;;  %v5457_v11 = vld [vmem:[#allocation5 + $0xbb0] ss:$8 sps:$4 sm:$0xff]  }
 0x165   :  { %3464 = vmatpush1.bf16.msra.mxu1 %v5366_v12  ;;  %v5462_v12 = vld [vmem:[#allocation5 + $0x4c4] ss:$8 sps:$4 sm:$0xff]  }
 0x166   :  { %3751 = vmatpush1.bf16.msra.mxu0 %v5369_v13  ;;  %3465 = vmatprep.subr.bf16.mxu1 %v5374_v14  ;;  %v5465_v13 = vld [vmem:[#allocation5 + $0xbc4] ss:$8 sps:$4 sm:$0xff]   ;;  %v5460_v14 = vld [vmem:[#allocation5 + $0x4c0] ss:$8 sps:$4 sm:$0xff]  }
 0x167   :  { %3752 = vmatprep.subr.bf16.mxu0 %v5377_v15  ;;  %v5463_v15 = vld [vmem:[#allocation5 + $0xbc0] ss:$8 sps:$4 sm:$0xff]  }
 0x169   :  { %3466 = vmatpush1.bf16.msra.mxu1 %v5372_v16  ;;  %v5468_v16 = vld [vmem:[#allocation5 + $0x4d4] ss:$8 sps:$4 sm:$0xff]  }
 0x16a   :  { %3753 = vmatpush1.bf16.msra.mxu0 %v5375_v17  ;;  %3467 = vmatprep.subr.bf16.mxu1 %v5380_v19  ;;  %v5471_v17 = vld [vmem:[#allocation5 + $0xbd4] ss:$8 sps:$4 sm:$0xff]   ;;  %v5466_v19 = vld [vmem:[#allocation5 + $0x4d0] ss:$8 sps:$4 sm:$0xff]  }
 0x16b   :  { %3754 = vmatprep.subr.bf16.mxu0 %v5383_v21  ;;  %v5469_v21 = vld [vmem:[#allocation5 + $0xbd0] ss:$8 sps:$4 sm:$0xff]  }
 0x16d   :  { %3468 = vmatpush1.bf16.msra.mxu1 %v5378_v22  ;;  %v5474_v22 = vld [vmem:[#allocation5 + $0x4e4] ss:$8 sps:$4 sm:$0xff]  }
 0x16e   :  { %3755 = vmatpush1.bf16.msra.mxu0 %v5381_v23  ;;  %3478 = vmatprep.subr.bf16.mxu1 %v5388_v26  ;;  %v5477_v23 = vld [vmem:[#allocation5 + $0xbe4] ss:$8 sps:$4 sm:$0xff]   ;;  %v5472_v26 = vld [vmem:[#allocation5 + $0x4e0] ss:$8 sps:$4 sm:$0xff]  }
 0x16f   :  { %3765 = vmatprep.subr.bf16.mxu0 %v5393_v27  ;;  %v5475_v27 = vld [vmem:[#allocation5 + $0xbe0] ss:$8 sps:$4 sm:$0xff]  }
 0x170   :  { %3470 = vmatmul.mubr.bf16.vlgmr.msra.gmra.mrb[0].mxu1 %v4300_v29  ;;  %v5480_v29 = vld [vmem:[#allocation5 + $0x4f4] ss:$8 sps:$4 sm:$0xff]  }
 0x171   :  { %3757 = vmatmul.mubr.bf16.vlgmr.msra.gmra.mrb[0].mxu0 %v4314_v18  ;;  %3479 = vmatpush1.bf16.msra.mxu1 %v5386_v30  ;;  %v5483_v18 = vld [vmem:[#allocation5 + $0xbf4] ss:$8 sps:$4 sm:$0xff]   ;;  %v5478_v30 = vld [vmem:[#allocation5 + $0x4f0] ss:$8 sps:$4 sm:$0xff]  }
 0x172   :  { %3766 = vmatpush1.bf16.msra.mxu0 %v5391_v31  ;;  %3480 = vmatprep.subr.bf16.mxu1 %v5396_v32  ;;  %v5481_v31 = vld [vmem:[#allocation5 + $0xbf0] ss:$8 sps:$4 sm:$0xff]   ;;  %v5488_v32 = vld [vmem:[#allocation5 + $0x504] ss:$8 sps:$4 sm:$0xff]  }
 0x173   :  { %3767 = vmatprep.subr.bf16.mxu0 %v5399_v33  ;;  %3510 = vmatprep.mubr.bf16.mxu1 %v4303_v34  ;;  %v5493_v33 = vld [vmem:[#allocation5 + $0xc04] ss:$8 sps:$4 sm:$0xff]  }
 0x174   :  { %3797 = vmatprep.mubr.bf16.mxu0 %v4317_v35  ;;  %v6149_v34 = vld [vmem:[#allocation2 + $0x28] sm:$0xff] }
 0x175   :  { %3481 = vmatpush1.bf16.msra.mxu1 %v5394_v24  ;;  %v5486_v35 = vld [vmem:[#allocation5 + $0x500] ss:$8 sps:$4 sm:$0xff]  }
 0x176   :  { %3768 = vmatpush1.bf16.msra.mxu0 %v5397_v25  ;;  %3482 = vmatprep.subr.bf16.mxu1 %v5402_v36  ;;  %v5491_v24 = vld [vmem:[#allocation5 + $0xc00] ss:$8 sps:$4 sm:$0xff]   ;;  %v4302_v25 = vcombine.low %v6137_v28, %v6137_v28  ;;  %v4316_v36 = vcombine.low %v6143_v20, %v6143_v20  ;;  %v5502_v28 = vld [vmem:[#allocation5 + $0x524] ss:$8 sps:$4 sm:$0xff]  }
 0x177   :  { %3769 = vmatprep.subr.bf16.mxu0 %v5405_v37  ;;  %v6155_v37 = vld [vmem:[#allocation2 + $0x60] sm:$0xff] }
 0x178   :  { %v5505_v20 = vld [vmem:[#allocation5 + $0xc24] ss:$8 sps:$4 sm:$0xff]  }
 0x179   :  { %3483 = vmatpush1.bf16.msra.mxu1 %v5400_v38  ;;  %v5496_v38 = vld [vmem:[#allocation5 + $0x514] ss:$8 sps:$4 sm:$0xff]  }
 0x17a   :  { %3770 = vmatpush1.bf16.msra.mxu0 %v5403_v39  ;;  %3484 = vmatprep.subr.bf16.mxu1 %v5408_v40  ;;  %v5499_v39 = vld [vmem:[#allocation5 + $0xc14] ss:$8 sps:$4 sm:$0xff]   ;;  %v5494_v40 = vld [vmem:[#allocation5 + $0x510] ss:$8 sps:$4 sm:$0xff]  }
 0x17b   :  { %3771 = vmatprep.subr.bf16.mxu0 %v5411_v41  ;;  %v5497_v41 = vld [vmem:[#allocation5 + $0xc10] ss:$8 sps:$4 sm:$0xff]  }
 0x17d   :  { %3485 = vmatpush1.bf16.msra.mxu1 %v5406_v42  ;;  %v4305_v42 = vcombine.high %v6149_v34, %v6149_v34 }
 0x17e   :  { %3772 = vmatpush1.bf16.msra.mxu0 %v5409_v43  ;;  %3486 = vmatprep.subr.bf16.mxu1 %v5414_v44  ;;  %v4319_v43 = vcombine.high %v6155_v37, %v6155_v37  ;;  %v5500_v44 = vld [vmem:[#allocation5 + $0x520] ss:$8 sps:$4 sm:$0xff]  }
 0x17f   :  { %3773 = vmatprep.subr.bf16.mxu0 %v5417_v45  ;;  %v5503_v45 = vld [vmem:[#allocation5 + $0xc20] ss:$8 sps:$4 sm:$0xff]  }
 0x181   :  { %3487 = vmatpush1.bf16.msra.mxu1 %v5412_v46  ;;  %v5508_v46 = vld [vmem:[#allocation5 + $0x534] ss:$8 sps:$4 sm:$0xff]  }
 0x182   :  { %3774 = vmatpush1.bf16.msra.mxu0 %v5415_v47  ;;  %3488 = vmatprep.subr.bf16.mxu1 %v5420_v48  ;;  %v5511_v47 = vld [vmem:[#allocation5 + $0xc34] ss:$8 sps:$4 sm:$0xff]   ;;  %v5506_v48 = vld [vmem:[#allocation5 + $0x530] ss:$8 sps:$4 sm:$0xff]  }
 0x183   :  { %3775 = vmatprep.subr.bf16.mxu0 %v5423_v49  ;;  %v5509_v49 = vld [vmem:[#allocation5 + $0xc30] ss:$8 sps:$4 sm:$0xff]  }
 0x185   :  { %3489 = vmatpush1.bf16.msra.mxu1 %v5418_v50  ;;  %v5514_v50 = vld [vmem:[#allocation5 + $0x544] ss:$8 sps:$4 sm:$0xff]  }
 0x186   :  { %3776 = vmatpush1.bf16.msra.mxu0 %v5421_v51  ;;  %3490 = vmatprep.subr.bf16.mxu1 %v5426_v52  ;;  %v5517_v51 = vld [vmem:[#allocation5 + $0xc44] ss:$8 sps:$4 sm:$0xff]   ;;  %v5512_v52 = vld [vmem:[#allocation5 + $0x540] ss:$8 sps:$4 sm:$0xff]  }
 0x187   :  { %3777 = vmatprep.subr.bf16.mxu0 %v5429_v53  ;;  %v5515_v53 = vld [vmem:[#allocation5 + $0xc40] ss:$8 sps:$4 sm:$0xff]  }
 0x189   :  { %3491 = vmatpush1.bf16.msra.mxu1 %v5424_v54  ;;  %v5520_v54 = vld [vmem:[#allocation5 + $0x554] ss:$8 sps:$4 sm:$0xff]  }
 0x18a   :  { %3778 = vmatpush1.bf16.msra.mxu0 %v5427_v55  ;;  %3492 = vmatprep.subr.bf16.mxu1 %v5432_v56  ;;  %v5523_v55 = vld [vmem:[#allocation5 + $0xc54] ss:$8 sps:$4 sm:$0xff]   ;;  %v5518_v56 = vld [vmem:[#allocation5 + $0x550] ss:$8 sps:$4 sm:$0xff]  }
 0x18b   :  { %3779 = vmatprep.subr.bf16.mxu0 %v5435_v57  ;;  %v5521_v57 = vld [vmem:[#allocation5 + $0xc50] ss:$8 sps:$4 sm:$0xff]  }
 0x18d   :  { %3493 = vmatpush1.bf16.msra.mxu1 %v5430_v58  ;;  %v5526_v58 = vld [vmem:[#allocation5 + $0x564] ss:$8 sps:$4 sm:$0xff]  }
 0x18e   :  { %3780 = vmatpush1.bf16.msra.mxu0 %v5433_v59  ;;  %3494 = vmatprep.subr.bf16.mxu1 %v5438_v60  ;;  %v5529_v59 = vld [vmem:[#allocation5 + $0xc64] ss:$8 sps:$4 sm:$0xff]   ;;  %v5524_v60 = vld [vmem:[#allocation5 + $0x560] ss:$8 sps:$4 sm:$0xff]  }
 0x18f   :  { %3781 = vmatprep.subr.bf16.mxu0 %v5441_v61  ;;  %v5527_v61 = vld [vmem:[#allocation5 + $0xc60] ss:$8 sps:$4 sm:$0xff]  }
 0x191   :  { %3495 = vmatpush1.bf16.msra.mxu1 %v5436_v62  ;;  %v5532_v62 = vld [vmem:[#allocation5 + $0x574] ss:$8 sps:$4 sm:$0xff]  }
 0x192   :  { %3782 = vmatpush1.bf16.msra.mxu0 %v5439_v63  ;;  %3496 = vmatprep.subr.bf16.mxu1 %v5444_v0  ;;  %v5535_v63 = vld [vmem:[#allocation5 + $0xc74] ss:$8 sps:$4 sm:$0xff]   ;;  %v5530_v0 = vld [vmem:[#allocation5 + $0x570] ss:$8 sps:$4 sm:$0xff]  }
 0x193   :  { %3783 = vmatprep.subr.bf16.mxu0 %v5447_v1  ;;  %v5533_v1 = vld [vmem:[#allocation5 + $0xc70] ss:$8 sps:$4 sm:$0xff]  }
 0x195   :  { %3497 = vmatpush1.bf16.msra.mxu1 %v5442_v2  ;;  %v5538_v2 = vld [vmem:[#allocation5 + $0x584] ss:$8 sps:$4 sm:$0xff]  }
 0x196   :  { %3784 = vmatpush1.bf16.msra.mxu0 %v5445_v3  ;;  %3498 = vmatprep.subr.bf16.mxu1 %v5450_v4  ;;  %v5541_v3 = vld [vmem:[#allocation5 + $0xc84] ss:$8 sps:$4 sm:$0xff]   ;;  %v5536_v4 = vld [vmem:[#allocation5 + $0x580] ss:$8 sps:$4 sm:$0xff]  }
 0x197   :  { %3785 = vmatprep.subr.bf16.mxu0 %v5453_v5  ;;  %v5539_v5 = vld [vmem:[#allocation5 + $0xc80] ss:$8 sps:$4 sm:$0xff]  }
 0x199   :  { %3499 = vmatpush1.bf16.msra.mxu1 %v5448_v6  ;;  %v5544_v6 = vld [vmem:[#allocation5 + $0x594] ss:$8 sps:$4 sm:$0xff]  }
 0x19a   :  { %3786 = vmatpush1.bf16.msra.mxu0 %v5451_v7  ;;  %3500 = vmatprep.subr.bf16.mxu1 %v5456_v8  ;;  %v5547_v7 = vld [vmem:[#allocation5 + $0xc94] ss:$8 sps:$4 sm:$0xff]   ;;  %v5542_v8 = vld [vmem:[#allocation5 + $0x590] ss:$8 sps:$4 sm:$0xff]  }
 0x19b   :  { %3787 = vmatprep.subr.bf16.mxu0 %v5459_v9  ;;  %v5545_v9 = vld [vmem:[#allocation5 + $0xc90] ss:$8 sps:$4 sm:$0xff]  }
 0x19d   :  { %3501 = vmatpush1.bf16.msra.mxu1 %v5454_v10  ;;  %v5550_v10 = vld [vmem:[#allocation5 + $0x5a4] ss:$8 sps:$4 sm:$0xff]  }
 0x19e   :  { %3788 = vmatpush1.bf16.msra.mxu0 %v5457_v11  ;;  %3502 = vmatprep.subr.bf16.mxu1 %v5462_v12  ;;  %v5553_v11 = vld [vmem:[#allocation5 + $0xca4] ss:$8 sps:$4 sm:$0xff]   ;;  %v5548_v12 = vld [vmem:[#allocation5 + $0x5a0] ss:$8 sps:$4 sm:$0xff]  }
 0x19f   :  { %3789 = vmatprep.subr.bf16.mxu0 %v5465_v13  ;;  %v5551_v13 = vld [vmem:[#allocation5 + $0xca0] ss:$8 sps:$4 sm:$0xff]  }
 0x1a1   :  { %3503 = vmatpush1.bf16.msra.mxu1 %v5460_v14  ;;  %v5556_v14 = vld [vmem:[#allocation5 + $0x5b4] ss:$8 sps:$4 sm:$0xff]  }
 0x1a2   :  { %3790 = vmatpush1.bf16.msra.mxu0 %v5463_v15  ;;  %3504 = vmatprep.subr.bf16.mxu1 %v5468_v16  ;;  %v5559_v15 = vld [vmem:[#allocation5 + $0xcb4] ss:$8 sps:$4 sm:$0xff]   ;;  %v5554_v16 = vld [vmem:[#allocation5 + $0x5b0] ss:$8 sps:$4 sm:$0xff]  }
 0x1a3   :  { %3791 = vmatprep.subr.bf16.mxu0 %v5471_v17  ;;  %v5557_v17 = vld [vmem:[#allocation5 + $0xcb0] ss:$8 sps:$4 sm:$0xff]  }
 0x1a5   :  { %3505 = vmatpush1.bf16.msra.mxu1 %v5466_v19  ;;  %v5562_v19 = vld [vmem:[#allocation5 + $0x5c4] ss:$8 sps:$4 sm:$0xff]  }
 0x1a6   :  { %3792 = vmatpush1.bf16.msra.mxu0 %v5469_v21  ;;  %3506 = vmatprep.subr.bf16.mxu1 %v5474_v22  ;;  %v5565_v21 = vld [vmem:[#allocation5 + $0xcc4] ss:$8 sps:$4 sm:$0xff]   ;;  %v5560_v22 = vld [vmem:[#allocation5 + $0x5c0] ss:$8 sps:$4 sm:$0xff]  }
 0x1a7   :  { %3793 = vmatprep.subr.bf16.mxu0 %v5477_v23  ;;  %v5563_v23 = vld [vmem:[#allocation5 + $0xcc0] ss:$8 sps:$4 sm:$0xff]  }
 0x1a9   :  { %3507 = vmatpush1.bf16.msra.mxu1 %v5472_v26  ;;  %v5568_v26 = vld [vmem:[#allocation5 + $0x5d4] ss:$8 sps:$4 sm:$0xff]  }
 0x1aa   :  { %3794 = vmatpush1.bf16.msra.mxu0 %v5475_v27  ;;  %3508 = vmatprep.subr.bf16.mxu1 %v5480_v29  ;;  %v5571_v27 = vld [vmem:[#allocation5 + $0xcd4] ss:$8 sps:$4 sm:$0xff]   ;;  %v5566_v29 = vld [vmem:[#allocation5 + $0x5d0] ss:$8 sps:$4 sm:$0xff]  }
 0x1ab   :  { %3795 = vmatprep.subr.bf16.mxu0 %v5483_v18  ;;  %v5569_v18 = vld [vmem:[#allocation5 + $0xcd0] ss:$8 sps:$4 sm:$0xff]  }
 0x1ad   :  { %3509 = vmatpush1.bf16.msra.mxu1 %v5478_v30  ;;  %v5574_v30 = vld [vmem:[#allocation5 + $0x5e4] ss:$8 sps:$4 sm:$0xff]  }
 0x1ae   :  { %3796 = vmatpush1.bf16.msra.mxu0 %v5481_v31  ;;  %3519 = vmatprep.subr.bf16.mxu1 %v5488_v32  ;;  %v5577_v31 = vld [vmem:[#allocation5 + $0xce4] ss:$8 sps:$4 sm:$0xff]   ;;  %v5572_v32 = vld [vmem:[#allocation5 + $0x5e0] ss:$8 sps:$4 sm:$0xff]  }
 0x1af   :  { %3806 = vmatprep.subr.bf16.mxu0 %v5493_v33  ;;  %v5575_v33 = vld [vmem:[#allocation5 + $0xce0] ss:$8 sps:$4 sm:$0xff]  }
 0x1b0   :  { %3511 = vmatmul.mubr.bf16.vlgmr.msra.gmra.mrb[0].mxu1 %v4302_v25  ;;  %v5578_v25 = vld [vmem:[#allocation5 + $0x5f0] ss:$8 sps:$4 sm:$0xff]  }
 0x1b1   :  { %3798 = vmatmul.mubr.bf16.vlgmr.msra.gmra.mrb[0].mxu0 %v4316_v36  ;;  %3520 = vmatpush1.bf16.msra.mxu1 %v5486_v35  ;;  %v5580_v35 = vld [vmem:[#allocation5 + $0x5f4] ss:$8 sps:$4 sm:$0xff]   ;;  %v5581_v36 = vld [vmem:[#allocation5 + $0xcf0] ss:$8 sps:$4 sm:$0xff]  }
 0x1b2   :  { %3807 = vmatpush1.bf16.msra.mxu0 %v5491_v24  ;;  %3521 = vmatprep.subr.bf16.mxu1 %v5496_v38  ;;  %v5583_v24 = vld [vmem:[#allocation5 + $0xcf4] ss:$8 sps:$4 sm:$0xff]   ;;  %v5588_v38 = vld [vmem:[#allocation5 + $0x604] ss:$8 sps:$4 sm:$0xff]  }
 0x1b3   :  { %3808 = vmatprep.subr.bf16.mxu0 %v5499_v39  ;;  %3551 = vmatprep.mubr.bf16.mxu1 %v4305_v42  ;;  %v5593_v39 = vld [vmem:[#allocation5 + $0xd04] ss:$8 sps:$4 sm:$0xff]   ;;  %v6165_v42 = vld [vmem:[#allocation2 + $0x30] sm:$0xff] }
 0x1b4   :  { %3838 = vmatprep.mubr.bf16.mxu0 %v4319_v43  ;;  %v6167_v43 = vld [vmem:[#allocation2 + $0x68] sm:$0xff] }
 0x1b5   :  { %3522 = vmatpush1.bf16.msra.mxu1 %v5494_v40  ;;  %v4304_v40 = vcombine.low %v6149_v34, %v6149_v34  ;;  %v4321_v34 = vcombine.high %v6167_v43, %v6167_v43 }
 0x1b6   :  { %3809 = vmatpush1.bf16.msra.mxu0 %v5497_v41  ;;  %3523 = vmatprep.subr.bf16.mxu1 %v5502_v28  ;;  %v4318_v41 = vcombine.low %v6155_v37, %v6155_v37  ;;  %v5586_v28 = vld [vmem:[#allocation5 + $0x600] ss:$8 sps:$4 sm:$0xff]   ;;  %v5594_v37 = vld [vmem:[#allocation5 + $0x610] ss:$8 sps:$4 sm:$0xff]  }
 0x1b7   :  { %3810 = vmatprep.subr.bf16.mxu0 %v5505_v20  ;;  %v5591_v20 = vld [vmem:[#allocation5 + $0xd00] ss:$8 sps:$4 sm:$0xff]  }
 0x1b9   :  { %3524 = vmatpush1.bf16.msra.mxu1 %v5500_v44  ;;  %v5596_v44 = vld [vmem:[#allocation5 + $0x614] ss:$8 sps:$4 sm:$0xff]  }
 0x1ba   :  { %3811 = vmatpush1.bf16.msra.mxu0 %v5503_v45  ;;  %3525 = vmatprep.subr.bf16.mxu1 %v5508_v46  ;;  %v5599_v45 = vld [vmem:[#allocation5 + $0xd14] ss:$8 sps:$4 sm:$0xff]   ;;  %v4307_v46 = vcombine.high %v6165_v42, %v6165_v42 }
 0x1bb   :  { %3812 = vmatprep.subr.bf16.mxu0 %v5511_v47  ;;  %v5597_v47 = vld [vmem:[#allocation5 + $0xd10] ss:$8 sps:$4 sm:$0xff]  }
 0x1bd   :  { %3526 = vmatpush1.bf16.msra.mxu1 %v5506_v48  ;;  %v5602_v48 = vld [vmem:[#allocation5 + $0x624] ss:$8 sps:$4 sm:$0xff]  }
 0x1be   :  { %3813 = vmatpush1.bf16.msra.mxu0 %v5509_v49  ;;  %3527 = vmatprep.subr.bf16.mxu1 %v5514_v50  ;;  %v5605_v49 = vld [vmem:[#allocation5 + $0xd24] ss:$8 sps:$4 sm:$0xff]   ;;  %v5600_v50 = vld [vmem:[#allocation5 + $0x620] ss:$8 sps:$4 sm:$0xff]  }
 0x1bf   :  { %3814 = vmatprep.subr.bf16.mxu0 %v5517_v51  ;;  %v5603_v51 = vld [vmem:[#allocation5 + $0xd20] ss:$8 sps:$4 sm:$0xff]  }
 0x1c1   :  { %3528 = vmatpush1.bf16.msra.mxu1 %v5512_v52  ;;  %v5608_v52 = vld [vmem:[#allocation5 + $0x634] ss:$8 sps:$4 sm:$0xff]  }
 0x1c2   :  { %3815 = vmatpush1.bf16.msra.mxu0 %v5515_v53  ;;  %3529 = vmatprep.subr.bf16.mxu1 %v5520_v54  ;;  %v5611_v53 = vld [vmem:[#allocation5 + $0xd34] ss:$8 sps:$4 sm:$0xff]   ;;  %v5606_v54 = vld [vmem:[#allocation5 + $0x630] ss:$8 sps:$4 sm:$0xff]  }
 0x1c3   :  { %3816 = vmatprep.subr.bf16.mxu0 %v5523_v55  ;;  %v5609_v55 = vld [vmem:[#allocation5 + $0xd30] ss:$8 sps:$4 sm:$0xff]  }
 0x1c5   :  { %3530 = vmatpush1.bf16.msra.mxu1 %v5518_v56  ;;  %v5614_v56 = vld [vmem:[#allocation5 + $0x644] ss:$8 sps:$4 sm:$0xff]  }
 0x1c6   :  { %3817 = vmatpush1.bf16.msra.mxu0 %v5521_v57  ;;  %3531 = vmatprep.subr.bf16.mxu1 %v5526_v58  ;;  %v5617_v57 = vld [vmem:[#allocation5 + $0xd44] ss:$8 sps:$4 sm:$0xff]   ;;  %v5612_v58 = vld [vmem:[#allocation5 + $0x640] ss:$8 sps:$4 sm:$0xff]  }
 0x1c7   :  { %3818 = vmatprep.subr.bf16.mxu0 %v5529_v59  ;;  %v5615_v59 = vld [vmem:[#allocation5 + $0xd40] ss:$8 sps:$4 sm:$0xff]  }
 0x1c9   :  { %3532 = vmatpush1.bf16.msra.mxu1 %v5524_v60  ;;  %v5620_v60 = vld [vmem:[#allocation5 + $0x654] ss:$8 sps:$4 sm:$0xff]  }
 0x1ca   :  { %3819 = vmatpush1.bf16.msra.mxu0 %v5527_v61  ;;  %3533 = vmatprep.subr.bf16.mxu1 %v5532_v62  ;;  %v5623_v61 = vld [vmem:[#allocation5 + $0xd54] ss:$8 sps:$4 sm:$0xff]   ;;  %v5618_v62 = vld [vmem:[#allocation5 + $0x650] ss:$8 sps:$4 sm:$0xff]  }
 0x1cb   :  { %3820 = vmatprep.subr.bf16.mxu0 %v5535_v63  ;;  %v5621_v63 = vld [vmem:[#allocation5 + $0xd50] ss:$8 sps:$4 sm:$0xff]  }
 0x1cd   :  { %3534 = vmatpush1.bf16.msra.mxu1 %v5530_v0  ;;  %v5626_v0 = vld [vmem:[#allocation5 + $0x664] ss:$8 sps:$4 sm:$0xff]  }
 0x1ce   :  { %3821 = vmatpush1.bf16.msra.mxu0 %v5533_v1  ;;  %3535 = vmatprep.subr.bf16.mxu1 %v5538_v2  ;;  %v5629_v1 = vld [vmem:[#allocation5 + $0xd64] ss:$8 sps:$4 sm:$0xff]   ;;  %v5624_v2 = vld [vmem:[#allocation5 + $0x660] ss:$8 sps:$4 sm:$0xff]  }
 0x1cf   :  { %3822 = vmatprep.subr.bf16.mxu0 %v5541_v3  ;;  %v5627_v3 = vld [vmem:[#allocation5 + $0xd60] ss:$8 sps:$4 sm:$0xff]  }
 0x1d1   :  { %3536 = vmatpush1.bf16.msra.mxu1 %v5536_v4  ;;  %v5632_v4 = vld [vmem:[#allocation5 + $0x674] ss:$8 sps:$4 sm:$0xff]  }
 0x1d2   :  { %3823 = vmatpush1.bf16.msra.mxu0 %v5539_v5  ;;  %3537 = vmatprep.subr.bf16.mxu1 %v5544_v6  ;;  %v5635_v5 = vld [vmem:[#allocation5 + $0xd74] ss:$8 sps:$4 sm:$0xff]   ;;  %v5630_v6 = vld [vmem:[#allocation5 + $0x670] ss:$8 sps:$4 sm:$0xff]  }
 0x1d3   :  { %3824 = vmatprep.subr.bf16.mxu0 %v5547_v7  ;;  %v5633_v7 = vld [vmem:[#allocation5 + $0xd70] ss:$8 sps:$4 sm:$0xff]  }
 0x1d5   :  { %3538 = vmatpush1.bf16.msra.mxu1 %v5542_v8  ;;  %v5638_v8 = vld [vmem:[#allocation5 + $0x684] ss:$8 sps:$4 sm:$0xff]  }
 0x1d6   :  { %3825 = vmatpush1.bf16.msra.mxu0 %v5545_v9  ;;  %3539 = vmatprep.subr.bf16.mxu1 %v5550_v10  ;;  %v5641_v9 = vld [vmem:[#allocation5 + $0xd84] ss:$8 sps:$4 sm:$0xff]   ;;  %v5636_v10 = vld [vmem:[#allocation5 + $0x680] ss:$8 sps:$4 sm:$0xff]  }
 0x1d7   :  { %3826 = vmatprep.subr.bf16.mxu0 %v5553_v11  ;;  %v5639_v11 = vld [vmem:[#allocation5 + $0xd80] ss:$8 sps:$4 sm:$0xff]  }
 0x1d9   :  { %3540 = vmatpush1.bf16.msra.mxu1 %v5548_v12  ;;  %v5644_v12 = vld [vmem:[#allocation5 + $0x694] ss:$8 sps:$4 sm:$0xff]  }
 0x1da   :  { %3827 = vmatpush1.bf16.msra.mxu0 %v5551_v13  ;;  %3541 = vmatprep.subr.bf16.mxu1 %v5556_v14  ;;  %v5647_v13 = vld [vmem:[#allocation5 + $0xd94] ss:$8 sps:$4 sm:$0xff]   ;;  %v5642_v14 = vld [vmem:[#allocation5 + $0x690] ss:$8 sps:$4 sm:$0xff]  }
 0x1db   :  { %3828 = vmatprep.subr.bf16.mxu0 %v5559_v15  ;;  %v5645_v15 = vld [vmem:[#allocation5 + $0xd90] ss:$8 sps:$4 sm:$0xff]  }
 0x1dd   :  { %3542 = vmatpush1.bf16.msra.mxu1 %v5554_v16  ;;  %v5650_v16 = vld [vmem:[#allocation5 + $0x6a4] ss:$8 sps:$4 sm:$0xff]  }
 0x1de   :  { %3829 = vmatpush1.bf16.msra.mxu0 %v5557_v17  ;;  %3543 = vmatprep.subr.bf16.mxu1 %v5562_v19  ;;  %v5653_v17 = vld [vmem:[#allocation5 + $0xda4] ss:$8 sps:$4 sm:$0xff]   ;;  %v5648_v19 = vld [vmem:[#allocation5 + $0x6a0] ss:$8 sps:$4 sm:$0xff]  }
 0x1df   :  { %3830 = vmatprep.subr.bf16.mxu0 %v5565_v21  ;;  %v5651_v21 = vld [vmem:[#allocation5 + $0xda0] ss:$8 sps:$4 sm:$0xff]  }
 0x1e1   :  { %3544 = vmatpush1.bf16.msra.mxu1 %v5560_v22  ;;  %v5656_v22 = vld [vmem:[#allocation5 + $0x6b4] ss:$8 sps:$4 sm:$0xff]  }
 0x1e2   :  { %3831 = vmatpush1.bf16.msra.mxu0 %v5563_v23  ;;  %3545 = vmatprep.subr.bf16.mxu1 %v5568_v26  ;;  %v5659_v23 = vld [vmem:[#allocation5 + $0xdb4] ss:$8 sps:$4 sm:$0xff]   ;;  %v5654_v26 = vld [vmem:[#allocation5 + $0x6b0] ss:$8 sps:$4 sm:$0xff]  }
 0x1e3   :  { %3832 = vmatprep.subr.bf16.mxu0 %v5571_v27  ;;  %v5657_v27 = vld [vmem:[#allocation5 + $0xdb0] ss:$8 sps:$4 sm:$0xff]  }
 0x1e5   :  { %3546 = vmatpush1.bf16.msra.mxu1 %v5566_v29  ;;  %v5662_v29 = vld [vmem:[#allocation5 + $0x6c4] ss:$8 sps:$4 sm:$0xff]  }
 0x1e6   :  { %3833 = vmatpush1.bf16.msra.mxu0 %v5569_v18  ;;  %3547 = vmatprep.subr.bf16.mxu1 %v5574_v30  ;;  %v5665_v18 = vld [vmem:[#allocation5 + $0xdc4] ss:$8 sps:$4 sm:$0xff]   ;;  %v5660_v30 = vld [vmem:[#allocation5 + $0x6c0] ss:$8 sps:$4 sm:$0xff]  }
 0x1e7   :  { %3834 = vmatprep.subr.bf16.mxu0 %v5577_v31  ;;  %v5663_v31 = vld [vmem:[#allocation5 + $0xdc0] ss:$8 sps:$4 sm:$0xff]  }
 0x1e9   :  { %3548 = vmatpush1.bf16.msra.mxu1 %v5572_v32  ;;  %v5668_v32 = vld [vmem:[#allocation5 + $0x6d4] ss:$8 sps:$4 sm:$0xff]  }
 0x1ea   :  { %3835 = vmatpush1.bf16.msra.mxu0 %v5575_v33  ;;  %3549 = vmatprep.subr.bf16.mxu1 %v5580_v35  ;;  %v5671_v33 = vld [vmem:[#allocation5 + $0xdd4] ss:$8 sps:$4 sm:$0xff]   ;;  %v5666_v35 = vld [vmem:[#allocation5 + $0x6d0] ss:$8 sps:$4 sm:$0xff]  }
 0x1eb   :  { %3836 = vmatprep.subr.bf16.mxu0 %v5583_v24  ;;  %v5669_v24 = vld [vmem:[#allocation5 + $0xdd0] ss:$8 sps:$4 sm:$0xff]  }
 0x1ed   :  { %3550 = vmatpush1.bf16.msra.mxu1 %v5578_v25  ;;  %v5674_v25 = vld [vmem:[#allocation5 + $0x6e4] ss:$8 sps:$4 sm:$0xff]  }
 0x1ee   :  { %3837 = vmatpush1.bf16.msra.mxu0 %v5581_v36  ;;  %3560 = vmatprep.subr.bf16.mxu1 %v5588_v38  ;;  %v5677_v36 = vld [vmem:[#allocation5 + $0xde4] ss:$8 sps:$4 sm:$0xff]   ;;  %v5672_v38 = vld [vmem:[#allocation5 + $0x6e0] ss:$8 sps:$4 sm:$0xff]  }
 0x1ef   :  { %3847 = vmatprep.subr.bf16.mxu0 %v5593_v39  ;;  %v5675_v39 = vld [vmem:[#allocation5 + $0xde0] ss:$8 sps:$4 sm:$0xff]  }
 0x1f0   :  { %3552 = vmatmul.mubr.bf16.vlgmr.msra.gmra.mrb[0].mxu1 %v4304_v40  ;;  %v5680_v40 = vld [vmem:[#allocation5 + $0x6f4] ss:$8 sps:$4 sm:$0xff]  }
 0x1f1   :  { %3839 = vmatmul.mubr.bf16.vlgmr.msra.gmra.mrb[0].mxu0 %v4318_v41  ;;  %3561 = vmatpush1.bf16.msra.mxu1 %v5586_v28  ;;  %v5683_v41 = vld [vmem:[#allocation5 + $0xdf4] ss:$8 sps:$4 sm:$0xff]   ;;  %v5678_v28 = vld [vmem:[#allocation5 + $0x6f0] ss:$8 sps:$4 sm:$0xff]  }
 0x1f2   :  { %3848 = vmatpush1.bf16.msra.mxu0 %v5591_v20  ;;  %3562 = vmatprep.subr.bf16.mxu1 %v5596_v44  ;;  %v5681_v20 = vld [vmem:[#allocation5 + $0xdf0] ss:$8 sps:$4 sm:$0xff]   ;;  %v5690_v44 = vld [vmem:[#allocation5 + $0xe04] ss:$8 sps:$4 sm:$0xff]  }
 0x1f3   :  { %3849 = vmatprep.subr.bf16.mxu0 %v5599_v45  ;;  %3592 = vmatprep.mubr.bf16.mxu1 %v4307_v46  ;;  %v6173_v45 = vld [vmem:[#allocation2 + $0x70] sm:$0xff]  ;;  %v4306_v46 = vcombine.low %v6165_v42, %v6165_v42  ;;  %v5694_v42 = vld [vmem:[#allocation5 + $0xe20] ss:$8 sps:$4 sm:$0xff]  }
 0x1f4   :  { %3879 = vmatprep.mubr.bf16.mxu0 %v4321_v34  ;;  %v4320_v34 = vcombine.low %v6167_v43, %v6167_v43  ;;  %v5697_v43 = vld [vmem:[#allocation5 + $0xe30] ss:$8 sps:$4 sm:$0xff]  }
 0x1f5   :  { %3563 = vmatpush1.bf16.msra.mxu1 %v5594_v37  ;;  %v5688_v37 = vld [vmem:[#allocation5 + $0xe00] ss:$8 sps:$4 sm:$0xff]  }
 0x1f6   :  { %3850 = vmatpush1.bf16.msra.mxu0 %v5597_v47  ;;  %3564 = vmatprep.subr.bf16.mxu1 %v5602_v48  ;;  %v4323_v47 = vcombine.high %v6173_v45, %v6173_v45  ;;  %v5693_v48 = vld [vmem:[#allocation5 + $0xe14] ss:$8 sps:$4 sm:$0xff]  }
 0x1f7   :  { %3851 = vmatprep.subr.bf16.mxu0 %v5605_v49  ;;  %v5691_v49 = vld [vmem:[#allocation5 + $0xe10] ss:$8 sps:$4 sm:$0xff]  }
 0x1f9   :  { %3565 = vmatpush1.bf16.msra.mxu1 %v5600_v50  ;;  %v5696_v50 = vld [vmem:[#allocation5 + $0xe24] ss:$8 sps:$4 sm:$0xff]  }
 0x1fa   :  { %3852 = vmatpush1.bf16.msra.mxu0 %v5603_v51  ;;  %3566 = vmatprep.subr.bf16.mxu1 %v5608_v52  ;;  %v5699_v51 = vld [vmem:[#allocation5 + $0xe34] ss:$8 sps:$4 sm:$0xff]   ;;  %v5702_v52 = vld [vmem:[#allocation5 + $0xe44] ss:$8 sps:$4 sm:$0xff]  }
 0x1fb   :  { %3853 = vmatprep.subr.bf16.mxu0 %v5611_v53  ;;  %v5700_v53 = vld [vmem:[#allocation5 + $0xe40] ss:$8 sps:$4 sm:$0xff]  }
 0x1fd   :  { %3567 = vmatpush1.bf16.msra.mxu1 %v5606_v54  ;;  %v5705_v54 = vld [vmem:[#allocation5 + $0xe54] ss:$8 sps:$4 sm:$0xff]  }
 0x1fe   :  { %3854 = vmatpush1.bf16.msra.mxu0 %v5609_v55  ;;  %3568 = vmatprep.subr.bf16.mxu1 %v5614_v56  ;;  %v5703_v55 = vld [vmem:[#allocation5 + $0xe50] ss:$8 sps:$4 sm:$0xff]   ;;  %v5708_v56 = vld [vmem:[#allocation5 + $0xe64] ss:$8 sps:$4 sm:$0xff]  }
 0x1ff   :  { %3855 = vmatprep.subr.bf16.mxu0 %v5617_v57  ;;  %v5706_v57 = vld [vmem:[#allocation5 + $0xe60] ss:$8 sps:$4 sm:$0xff]  }
 0x201   :  { %3569 = vmatpush1.bf16.msra.mxu1 %v5612_v58  ;;  %v5711_v58 = vld [vmem:[#allocation5 + $0xe74] ss:$8 sps:$4 sm:$0xff]  }
 0x202   :  { %3856 = vmatpush1.bf16.msra.mxu0 %v5615_v59  ;;  %3570 = vmatprep.subr.bf16.mxu1 %v5620_v60  ;;  %v5709_v59 = vld [vmem:[#allocation5 + $0xe70] ss:$8 sps:$4 sm:$0xff]   ;;  %v5714_v60 = vld [vmem:[#allocation5 + $0xe84] ss:$8 sps:$4 sm:$0xff]  }
 0x203   :  { %3857 = vmatprep.subr.bf16.mxu0 %v5623_v61  ;;  %v5712_v61 = vld [vmem:[#allocation5 + $0xe80] ss:$8 sps:$4 sm:$0xff]  }
 0x205   :  { %3571 = vmatpush1.bf16.msra.mxu1 %v5618_v62  ;;  %v5717_v62 = vld [vmem:[#allocation5 + $0xe94] ss:$8 sps:$4 sm:$0xff]  }
 0x206   :  { %3858 = vmatpush1.bf16.msra.mxu0 %v5621_v63  ;;  %3572 = vmatprep.subr.bf16.mxu1 %v5626_v0  ;;  %v5715_v63 = vld [vmem:[#allocation5 + $0xe90] ss:$8 sps:$4 sm:$0xff]   ;;  %v5720_v0 = vld [vmem:[#allocation5 + $0xea4] ss:$8 sps:$4 sm:$0xff]  }
 0x207   :  { %3859 = vmatprep.subr.bf16.mxu0 %v5629_v1  ;;  %v5718_v1 = vld [vmem:[#allocation5 + $0xea0] ss:$8 sps:$4 sm:$0xff]  }
 0x209   :  { %3573 = vmatpush1.bf16.msra.mxu1 %v5624_v2  ;;  %v5723_v2 = vld [vmem:[#allocation5 + $0xeb4] ss:$8 sps:$4 sm:$0xff]  }
 0x20a   :  { %3860 = vmatpush1.bf16.msra.mxu0 %v5627_v3  ;;  %3574 = vmatprep.subr.bf16.mxu1 %v5632_v4  ;;  %v5721_v3 = vld [vmem:[#allocation5 + $0xeb0] ss:$8 sps:$4 sm:$0xff]   ;;  %v5726_v4 = vld [vmem:[#allocation5 + $0xec4] ss:$8 sps:$4 sm:$0xff]  }
 0x20b   :  { %3861 = vmatprep.subr.bf16.mxu0 %v5635_v5  ;;  %v5724_v5 = vld [vmem:[#allocation5 + $0xec0] ss:$8 sps:$4 sm:$0xff]  }
 0x20d   :  { %3575 = vmatpush1.bf16.msra.mxu1 %v5630_v6  ;;  %v5729_v6 = vld [vmem:[#allocation5 + $0xed4] ss:$8 sps:$4 sm:$0xff]  }
 0x20e   :  { %3862 = vmatpush1.bf16.msra.mxu0 %v5633_v7  ;;  %3576 = vmatprep.subr.bf16.mxu1 %v5638_v8  ;;  %v5727_v7 = vld [vmem:[#allocation5 + $0xed0] ss:$8 sps:$4 sm:$0xff]   ;;  %v5732_v8 = vld [vmem:[#allocation5 + $0xee4] ss:$8 sps:$4 sm:$0xff]  }
 0x20f   :  { %3863 = vmatprep.subr.bf16.mxu0 %v5641_v9  ;;  %v5730_v9 = vld [vmem:[#allocation5 + $0xee0] ss:$8 sps:$4 sm:$0xff]  }
 0x211   :  { %3577 = vmatpush1.bf16.msra.mxu1 %v5636_v10  ;;  %v5735_v10 = vld [vmem:[#allocation5 + $0xef4] ss:$8 sps:$4 sm:$0xff]  }
 0x212   :  { %3864 = vmatpush1.bf16.msra.mxu0 %v5639_v11  ;;  %3578 = vmatprep.subr.bf16.mxu1 %v5644_v12  ;;  %v5733_v11 = vld [vmem:[#allocation5 + $0xef0] ss:$8 sps:$4 sm:$0xff]   ;;  %v5740_v12 = vld [vmem:[#allocation5 + $0xf04] ss:$8 sps:$4 sm:$0xff]  }
 0x213   :  { %3865 = vmatprep.subr.bf16.mxu0 %v5647_v13  ;;  %v6181_v13 = vld [vmem:[#allocation2 + $0x78] sm:$0xff] }
 0x215   :  { %3579 = vmatpush1.bf16.msra.mxu1 %v5642_v14  ;;  %v4322_v14 = vcombine.low %v6173_v45, %v6173_v45  ;;  %v5765_v45 = vld [vmem:[#allocation5 + $0xf90] ss:$8 sps:$4 sm:$0xff]  }
 0x216   :  { %3866 = vmatpush1.bf16.msra.mxu0 %v5645_v15  ;;  %3580 = vmatprep.subr.bf16.mxu1 %v5650_v16  ;;  %v5738_v15 = vld [vmem:[#allocation5 + $0xf00] ss:$8 sps:$4 sm:$0xff]   ;;  %v4325_v16 = vcombine.high %v6181_v13, %v6181_v13 }
 0x217   :  { %3867 = vmatprep.subr.bf16.mxu0 %v5653_v17  ;;  %v5743_v17 = vld [vmem:[#allocation5 + $0xf14] ss:$8 sps:$4 sm:$0xff]  }
 0x219   :  { %3581 = vmatpush1.bf16.msra.mxu1 %v5648_v19  ;;  %v5741_v19 = vld [vmem:[#allocation5 + $0xf10] ss:$8 sps:$4 sm:$0xff]  }
 0x21a   :  { %3868 = vmatpush1.bf16.msra.mxu0 %v5651_v21  ;;  %3582 = vmatprep.subr.bf16.mxu1 %v5656_v22  ;;  %v5746_v21 = vld [vmem:[#allocation5 + $0xf24] ss:$8 sps:$4 sm:$0xff]   ;;  %v5744_v22 = vld [vmem:[#allocation5 + $0xf20] ss:$8 sps:$4 sm:$0xff]  }
 0x21b   :  { %3869 = vmatprep.subr.bf16.mxu0 %v5659_v23  ;;  %v5749_v23 = vld [vmem:[#allocation5 + $0xf34] ss:$8 sps:$4 sm:$0xff]  }
 0x21d   :  { %3583 = vmatpush1.bf16.msra.mxu1 %v5654_v26  ;;  %v5747_v26 = vld [vmem:[#allocation5 + $0xf30] ss:$8 sps:$4 sm:$0xff]  }
 0x21e   :  { %3870 = vmatpush1.bf16.msra.mxu0 %v5657_v27  ;;  %3584 = vmatprep.subr.bf16.mxu1 %v5662_v29  ;;  %v5752_v27 = vld [vmem:[#allocation5 + $0xf44] ss:$8 sps:$4 sm:$0xff]   ;;  %v5750_v29 = vld [vmem:[#allocation5 + $0xf40] ss:$8 sps:$4 sm:$0xff]  }
 0x21f   :  { %3871 = vmatprep.subr.bf16.mxu0 %v5665_v18  ;;  %v5755_v18 = vld [vmem:[#allocation5 + $0xf54] ss:$8 sps:$4 sm:$0xff]  }
 0x221   :  { %3585 = vmatpush1.bf16.msra.mxu1 %v5660_v30  ;;  %v5753_v30 = vld [vmem:[#allocation5 + $0xf50] ss:$8 sps:$4 sm:$0xff]  }
 0x222   :  { %3872 = vmatpush1.bf16.msra.mxu0 %v5663_v31  ;;  %3586 = vmatprep.subr.bf16.mxu1 %v5668_v32  ;;  %v5758_v31 = vld [vmem:[#allocation5 + $0xf64] ss:$8 sps:$4 sm:$0xff]   ;;  %v5756_v32 = vld [vmem:[#allocation5 + $0xf60] ss:$8 sps:$4 sm:$0xff]  }
 0x223   :  { %3873 = vmatprep.subr.bf16.mxu0 %v5671_v33  ;;  %v5761_v33 = vld [vmem:[#allocation5 + $0xf74] ss:$8 sps:$4 sm:$0xff]  }
 0x225   :  { %3587 = vmatpush1.bf16.msra.mxu1 %v5666_v35  ;;  %v5788_v35 = vld [vmem:[#allocation8 + $0x40] sm:$0xff]  }
 0x226   :  { %3874 = vmatpush1.bf16.msra.mxu0 %v5669_v24  ;;  %3588 = vmatprep.subr.bf16.mxu1 %v5674_v25  ;;  %v5789_v24 = vld [vmem:[#allocation8] sm:$0xff]   ;;  %v5790_v25 = vld [vmem:[#allocation8 + $0x48] sm:$0xff]  }
 0x227   :  { %3875 = vmatprep.subr.bf16.mxu0 %v5677_v36  ;;  %v5759_v36 = vld [vmem:[#allocation5 + $0xf70] ss:$8 sps:$4 sm:$0xff]  }
 0x229   :  { %3589 = vmatpush1.bf16.msra.mxu1 %v5672_v38  ;;  %v5791_v38 = vld [vmem:[#allocation8 + $0x8] sm:$0xff]  }
 0x22a   :  { %3876 = vmatpush1.bf16.msra.mxu0 %v5675_v39  ;;  %3590 = vmatprep.subr.bf16.mxu1 %v5680_v40  ;;  %v5764_v39 = vld [vmem:[#allocation5 + $0xf84] ss:$8 sps:$4 sm:$0xff]   ;;  %v5792_v40 = vld [vmem:[#allocation8 + $0x50] sm:$0xff]  }
 0x22b   :  { %3877 = vmatprep.subr.bf16.mxu0 %v5683_v41  ;;  %v5762_v41 = vld [vmem:[#allocation5 + $0xf80] ss:$8 sps:$4 sm:$0xff]  }
 0x22d   :  { %3591 = vmatpush1.bf16.msra.mxu1 %v5678_v28  ;;  %v5793_v28 = vld [vmem:[#allocation8 + $0x10] sm:$0xff]  }
 0x22e   :  { %3878 = vmatpush1.bf16.msra.mxu0 %v5681_v20  ;;  %4864 = vmatprep.subr.bf16.mxu1 %v5788_v35  ;;  %v5767_v20 = vld [vmem:[#allocation5 + $0xf94] ss:$8 sps:$4 sm:$0xff]  }
 0x22f   :  { %3888 = vmatprep.subr.bf16.mxu0 %v5690_v44  ;;  %v5794_v44 = vld [vmem:[#allocation8 + $0x58] sm:$0xff]   ;;  %v5810_v35 = vld [vmem:[%s6233_s5 + $0x30] sm:$0xff]  }
 0x230   :  { %3593 = vmatmul.mubr.bf16.vlgmr.msra.gmra.mrb[0].mxu1 %v4306_v46  ;;  %v5795_v46 = vld [vmem:[#allocation8 + $0x18] sm:$0xff]  }
 0x231   :  { %3880 = vmatmul.mubr.bf16.vlgmr.msra.gmra.mrb[0].mxu0 %v4320_v34  ;;  %4865 = vmatpush3.bf16.msra.mxu1 %v5789_v24  ;;  %v5770_v34 = vld [vmem:[#allocation5 + $0xfa4] ss:$8 sps:$4 sm:$0xff]   ;;  %v5811_v24 = vld [vmem:[%s6233_s5 + $0x38] sm:$0xff]  }
 0x232   :  { %3889 = vmatpush1.bf16.msra.mxu0 %v5688_v37  ;;  %3920 = vmatprep.mubr.bf16.mxu0 %v4323_v47  ;;  %v5796_v37 = vld [vmem:[#allocation8 + $0x60] sm:$0xff]  }
 0x233   :  { %3890 = vmatprep.subr.bf16.mxu0 %v5693_v48  ;;  %4866 = vmatprep.subr.bf16.mxu1 %v5790_v25  ;;  %v5768_v47 = vld [vmem:[#allocation5 + $0xfa0] ss:$8 sps:$4 sm:$0xff]  }
 0x234   :  { %v5797_v48 = vld [vmem:[#allocation8 + $0x20] sm:$0xff]  }
 0x235   :  { %4867 = vmatpush3.bf16.msra.mxu1 %v5791_v38 }
 0x236   :  { %3891 = vmatpush1.bf16.msra.mxu0 %v5691_v49  ;;  %4868 = vmatprep.subr.bf16.mxu1 %v5792_v40  ;;  %v5773_v49 = vld [vmem:[#allocation5 + $0xfb4] ss:$8 sps:$4 sm:$0xff]  }
 0x237   :  { %3892 = vmatprep.subr.bf16.mxu0 %v5696_v50  ;;  %v5798_v50 = vld [vmem:[#allocation8 + $0x68] sm:$0xff]  }
 0x239   :  { %4869 = vmatpush3.bf16.msra.mxu1 %v5793_v28 }
 0x23a   :  { %3893 = vmatpush1.bf16.msra.mxu0 %v5694_v42  ;;  %4870 = vmatprep.subr.bf16.mxu1 %v5794_v44  ;;  %v5771_v42 = vld [vmem:[#allocation5 + $0xfb0] ss:$8 sps:$4 sm:$0xff]  }
 0x23b   :  { %3894 = vmatprep.subr.bf16.mxu0 %v5699_v51  ;;  %v5799_v51 = vld [vmem:[#allocation8 + $0x28] sm:$0xff]  }
 0x23d   :  { %4871 = vmatpush3.bf16.msra.mxu1 %v5795_v46 }
 0x23e   :  { %3895 = vmatpush1.bf16.msra.mxu0 %v5697_v43  ;;  %4872 = vmatprep.subr.bf16.mxu1 %v5796_v37  ;;  %v5776_v43 = vld [vmem:[#allocation5 + $0xfc4] ss:$8 sps:$4 sm:$0xff]  }
 0x23f   :  { %3896 = vmatprep.subr.bf16.mxu0 %v5702_v52  ;;  %v5774_v52 = vld [vmem:[#allocation5 + $0xfc0] ss:$8 sps:$4 sm:$0xff]  }
 0x241   :  { %4873 = vmatpush3.bf16.msra.mxu1 %v5797_v48 }
 0x242   :  { %3897 = vmatpush1.bf16.msra.mxu0 %v5700_v53  ;;  %4874 = vmatprep.subr.bf16.mxu1 %v5798_v50  ;;  %v5779_v53 = vld [vmem:[#allocation5 + $0xfd4] ss:$8 sps:$4 sm:$0xff]  }
 0x243   :  { %3898 = vmatprep.subr.bf16.mxu0 %v5705_v54  ;;  %v5777_v54 = vld [vmem:[#allocation5 + $0xfd0] ss:$8 sps:$4 sm:$0xff]  }
 0x245   :  { %4875 = vmatpush3.bf16.msra.mxu1 %v5799_v51 }
 0x246   :  { %3899 = vmatpush1.bf16.msra.mxu0 %v5703_v55  ;;  %v5782_v55 = vld [vmem:[#allocation5 + $0xfe4] ss:$8 sps:$4 sm:$0xff]  }
 0x247   :  { %3900 = vmatprep.subr.bf16.mxu0 %v5708_v56  ;;  %v5780_v56 = vld [vmem:[#allocation5 + $0xfe0] ss:$8 sps:$4 sm:$0xff]  }
 0x24a   :  { %3901 = vmatpush1.bf16.msra.mxu0 %v5706_v57  ;;  %v5785_v57 = vld [vmem:[#allocation5 + $0xff4] ss:$8 sps:$4 sm:$0xff]  }
 0x24b   :  { %3902 = vmatprep.subr.bf16.mxu0 %v5711_v58  ;;  %v5783_v58 = vld [vmem:[#allocation5 + $0xff0] ss:$8 sps:$4 sm:$0xff]  }
 0x24e   :  { %3903 = vmatpush1.bf16.msra.mxu0 %v5709_v59  ;;  %v4324_v59 = vcombine.low %v6181_v13, %v6181_v13 }
 0x24f   :  { %3904 = vmatprep.subr.bf16.mxu0 %v5714_v60  ;;  %v5800_v60 = vld [vmem:[#allocation8 + $0x70] sm:$0xff]  }
 0x250   :  { %4876 = vmatprep.subr.bf16.mxu1 %v5800_v60 }
 0x252   :  { %3905 = vmatpush1.bf16.msra.mxu0 %v5712_v61 }
 0x253   :  { %3906 = vmatprep.subr.bf16.mxu0 %v5717_v62  ;;  %v5801_v62 = vld [vmem:[#allocation8 + $0x30] sm:$0xff]  }
 0x254   :  { %4877 = vmatpush3.bf16.msra.mxu1 %v5801_v62 }
 0x256   :  { %3907 = vmatpush1.bf16.msra.mxu0 %v5715_v63 }
 0x257   :  { %3908 = vmatprep.subr.bf16.mxu0 %v5720_v0 }
 0x25a   :  { %3909 = vmatpush1.bf16.msra.mxu0 %v5718_v1 }
 0x25b   :  { %3910 = vmatprep.subr.bf16.mxu0 %v5723_v2  ;;  %v5802_v2 = vld [vmem:[#allocation8 + $0x78] sm:$0xff]  }
 0x25c   :  { %4878 = vmatprep.subr.bf16.mxu1 %v5802_v2 }
 0x25e   :  { %3911 = vmatpush1.bf16.msra.mxu0 %v5721_v3  ;;  %v5803_v3 = vld [vmem:[#allocation8 + $0x38] sm:$0xff]  }
 0x25f   :  { %3912 = vmatprep.subr.bf16.mxu0 %v5726_v4  ;;  %4879 = vmatpush3.bf16.msra.mxu1 %v5803_v3  ;;  %v5990_v4 = vmov 0.0  }
 0x260   :  { %4895 = vmatprep.subr.bf16.mxu1 %v5990_v4 }
 0x262   :  { %3913 = vmatpush1.bf16.msra.mxu0 %v5724_v5  ;;  %v632_v5 = vlaneseq }
 0x263   :  { %3914 = vmatprep.subr.bf16.mxu0 %v5729_v6 }
 0x264   :  { %v633_v6 = vshrl.u32 %v632_v5, 7 }
 0x266   :  { %3915 = vmatpush1.bf16.msra.mxu0 %v5727_v7  ;;  %v634_v7 = vsub.s32 0, %v633_v6 }
 0x267   :  { %3916 = vmatprep.subr.bf16.mxu0 %v5732_v8  ;;  %v630_v8 = vld [vmem:[#allocation7] sm:$0x3] }
 0x26a   :  { %3917 = vmatpush1.bf16.msra.mxu0 %v5730_v9  ;;  %v638_v9 = vsub.s32 1, %v633_v6 }
 0x26b   :  { %3918 = vmatprep.subr.bf16.mxu0 %v5735_v10  ;;  %v635_v10 = vrot.slane %v630_v8, %v634_v7 }
 0x26e   :  { %3919 = vmatpush1.bf16.msra.mxu0 %v5733_v11  ;;  %v639_v11 = vrot.slane %v630_v8, %v638_v9 }
 0x26f   :  { %3929 = vmatprep.subr.bf16.mxu0 %v5740_v12 }
 0x271   :  { %3921 = vmatmul.mubr.bf16.vlgmr.msra.gmra.mrb[0].mxu0 %v4322_v14 }
 0x272   :  { %3930 = vmatpush1.bf16.msra.mxu0 %v5738_v15  ;;  %3961 = vmatprep.mubr.bf16.mxu0 %v4325_v16 }
 0x273   :  { %3931 = vmatprep.subr.bf16.mxu0 %v5743_v17 }
 0x276   :  { %3932 = vmatpush1.bf16.msra.mxu0 %v5741_v19 }
 0x277   :  { %3933 = vmatprep.subr.bf16.mxu0 %v5746_v21 }
 0x27a   :  { %3934 = vmatpush1.bf16.msra.mxu0 %v5744_v22 }
 0x27b   :  { %3935 = vmatprep.subr.bf16.mxu0 %v5749_v23 }
 0x27e   :  { %3936 = vmatpush1.bf16.msra.mxu0 %v5747_v26 }
 0x27f   :  { %3937 = vmatprep.subr.bf16.mxu0 %v5752_v27  ;;  %v5804_v27 = vld [vmem:[%s6233_s5] sm:$0xff]  }
 0x282   :  { %3938 = vmatpush1.bf16.msra.mxu0 %v5750_v29 }
 0x283   :  { %3939 = vmatprep.subr.bf16.mxu0 %v5755_v18  ;;  %v5805_v18 = vld [vmem:[%s6233_s5 + $0x8] sm:$0xff]  }
 0x286   :  { %3940 = vmatpush1.bf16.msra.mxu0 %v5753_v30  ;;  %v5806_v30 = vld [vmem:[%s6233_s5 + $0x10] sm:$0xff]  }
 0x287   :  { %3941 = vmatprep.subr.bf16.mxu0 %v5758_v31  ;;  %v5807_v31 = vld [vmem:[%s6233_s5 + $0x18] sm:$0xff]  }
 0x28a   :  { %3942 = vmatpush1.bf16.msra.mxu0 %v5756_v32  ;;  %v5808_v32 = vld [vmem:[%s6233_s5 + $0x20] sm:$0xff]  }
 0x28b   :  { %3943 = vmatprep.subr.bf16.mxu0 %v5761_v33  ;;  %v5809_v33 = vld [vmem:[%s6233_s5 + $0x28] sm:$0xff]   ;;  %s5992_s5 = smov [#allocation13]  }
 0x28c   :  { %s4282_s15 = sshll.u32 %s5992_s5, 4  ;;  %s4283_s15 = int_to_ptr.vmem [resolvable:$true] %s4282_s15 }
 0x28d   :  { %s5948_s3 = scalar_lea.vmem %s4283_s15, 128  ;;  %p5953_p7 = scmp.lt.s32.totalorder %s4283_s15, %s4283_s15 }
 0x28e   :  { %3944 = vmatpush1.bf16.msra.mxu0 %v5759_v36  ;;  %v4838_v36 = vld [vmem:[#allocation10] ss:$0 sm:$0xff]  ;;  %p5949_p6 = scmp.ne.s32.totalorder %s4283_s15, %s5948_s3  ;;  %p5954_p8 = scmp.lt.s32.totalorder %s5948_s3, %s5948_s3 }
 0x28f   :  { %3945 = vmatprep.subr.bf16.mxu0 %v5764_v39 }
 0x290   :  { %p5955_p9 = por %p5954_p8, %p5953_p7 }
 0x292   :  { %3946 = vmatpush1.bf16.msra.mxu0 %v5762_v41  ;;  %p5956_p10 = pnand %p5955_p9, %p5949_p6 }
 0x293   :  { %3947 = vmatprep.subr.bf16.mxu0 %v5767_v20 }
 0x296   :  { %3948 = vmatpush1.bf16.msra.mxu0 %v5765_v45  ;;  %v4855_v45 = vld [vmem:[#allocation11] ss:$0 sm:$0xff] }
 0x297   :  { %3949 = vmatprep.subr.bf16.mxu0 %v5770_v34 }
 0x29a   :  { %3950 = vmatpush1.bf16.msra.mxu0 %v5768_v47 }
 0x29b   :  { %3951 = vmatprep.subr.bf16.mxu0 %v5773_v49 }
 0x29e   :  { %3952 = vmatpush1.bf16.msra.mxu0 %v5771_v42 }
 0x29f   :  { %3953 = vmatprep.subr.bf16.mxu0 %v5776_v43 }
 0x2a2   :  { %3954 = vmatpush1.bf16.msra.mxu0 %v5774_v52 }
 0x2a3   :  { %3955 = vmatprep.subr.bf16.mxu0 %v5779_v53 }
 0x2a6   :  { %3956 = vmatpush1.bf16.msra.mxu0 %v5777_v54 }
 0x2a7   :  { %3957 = vmatprep.subr.bf16.mxu0 %v5782_v55 }
 0x2aa   :  { %3958 = vmatpush1.bf16.msra.mxu0 %v5780_v56 }
 0x2ab   :  { %3959 = vmatprep.subr.bf16.mxu0 %v5785_v57 }
 0x2ae   :  { %3960 = vmatpush1.bf16.msra.mxu0 %v5783_v58 }
 0x2b1   :  { %3962 = vmatmul.mubr.bf16.vlgmr.msra.gmra.mrb[0].mxu0 %v4324_v59 }
 0x303   :  { %v3594_v61 = vpop.f32.mrb[0].mxu1 }
 0x304   :  { %v3596_v63 = vpop.f32.mrb[1].mxu1  ;;  %v4915_v12 = vadd.f32 %v3594_v61, %v635_v10 }
 0x305   :  { %v3598_v0 = vpop.f32.mrb[2].mxu1  ;;  %v4917_v13 = vadd.f32 %v3596_v63, %v639_v11 }
 0x306   :  { %v3599_v1 = vpop.f32.mrb[3].mxu1 }
 0x384   :  { %v3963_v14 = vpop.f32.mrb[0].mxu0 }
 0x385   :  { %v4916_v15 = vadd.f32 %v4915_v12, %v3963_v14  ;;  %v3965_v16 = vpop.f32.mrb[1].mxu0 }
 0x386   :  { %v4918_v17 = vadd.f32 %v4917_v13, %v3965_v16  ;;  %v3967_v19 = vpop.f32.mrb[2].mxu0 }
 0x387   :  { %v3970_v21 = vmax.f32 %v4916_v15, 0.0  ;;  %v3968_v22 = vpop.f32.mrb[3].mxu0 }
 0x388   :  { %v3971_v23 = vmax.f32 %v4918_v17, 0.0 }
 0x389   :  { %v3972_v29 = vpack.c.bf16 %v3970_v21, %v3970_v21 }
 0x38a   :  { %v3973_v26 = vpack.c.bf16 %v3971_v23, %v3971_v23 }
 0x38c   :  { %4141 = vmatprep.mubr.bf16.mxu1 %v3973_v26 }
 0x38d   :  { %4142 = vmatmul.mubr.bf16.vlgmr.msra.gmra.mrb[4].mxu1 %v3972_v29 }
 0x38e   :  { %4896 = vmatpush3.bf16.msra.mxu1 %v5804_v27  ;;  %4911 = vmatprep.mubr.msk.bf16.mxu1 %vm5991_vm0, %v5990_v4 }
 0x38f   :  { %4897 = vmatprep.subr.bf16.mxu1 %v5990_v4 }
 0x392   :  { %4898 = vmatpush3.bf16.msra.mxu1 %v5805_v18 }
 0x393   :  { %4899 = vmatprep.subr.bf16.mxu1 %v5990_v4 }
 0x396   :  { %4900 = vmatpush3.bf16.msra.mxu1 %v5806_v30 }
 0x397   :  { %4901 = vmatprep.subr.bf16.mxu1 %v5990_v4 }
 0x39a   :  { %4902 = vmatpush3.bf16.msra.mxu1 %v5807_v31 }
 0x39b   :  { %4903 = vmatprep.subr.bf16.mxu1 %v5990_v4 }
 0x39e   :  { %4904 = vmatpush3.bf16.msra.mxu1 %v5808_v32 }
 0x39f   :  { %4905 = vmatprep.subr.bf16.mxu1 %v5990_v4 }
 0x3a2   :  { %4906 = vmatpush3.bf16.msra.mxu1 %v5809_v33 }
 0x3a3   :  { %4907 = vmatprep.subr.bf16.mxu1 %v5990_v4 }
 0x3a6   :  { %4908 = vmatpush3.bf16.msra.mxu1 %v5810_v35 }
 0x3a7   :  { %4909 = vmatprep.subr.bf16.mxu1 %v5990_v4 }
 0x3aa   :  { %4910 = vmatpush3.bf16.msra.mxu1 %v5811_v24 }
 0x460   :  { %v4880_v25 = vpop.f32.mrb[4].mxu1 }
 0x461   :  { %v4881_v38 = vpop.f32.mrb[5].mxu1 }
 0x462   :  { %v4882_v39 = vadd.f32 %v4881_v38, %v4880_v25  ;;  %v4883_v40 = vpop.f32.mrb[6].mxu1 }
 0x463   :  { %v4884_v41 = vpop.f32.mrb[7].mxu1 }
 0x464   :  { %v4144_v28 = vadd.f32 %v4882_v39, %v4838_v36 }
 0x466   :  { %v4149_v20 = vmax.f32 %v4144_v28, 0.0 }
 0x468   :  { %v4150_v44 = vpack.c.bf16 %v4149_v20, %v4149_v20 }
 0x46a   :  { %4912 = vmatmul.mubr.bf16.vlgmr.msra.gmra.mrb[8].mxu1 %v4150_v44 }
 0x53d   :  { %v4256_v46 = vpop.f32.mrb[8].mxu1 }
 0x53e   :  { %v4257_v34 = vadd.f32 %v4855_v45, %v4256_v46  ;;  %v4913_v37 = vpop.f32.mrb[9].mxu1 }
 0x53f   :  { %v4259_v47 = vpop.f32.mrb[10].mxu1 }
 0x540   :  { %v4914_v48 = vpop.f32.mrb[11].mxu1  ;;  %v4263_v49 = vsel %vm4262_vm1, %v4257_v34, -inf }
 0x541   :  { %4264 = vmax.xlane.f32.xlu0 %v4263_v49 }
 0x5ce   :  { %v4265_v50 = vpop.xlane.xlu0 %4264 }
 0x5cf   :  { %v4266_v42 = vsub.f32 %v4257_v34, %v4265_v50 }
 0x5d1   :  { %v4267_v51 = vmul.f32 1.442695, %v4266_v42 }
 0x5d3   :  { %5812 = vpow2.f32 %v4267_v51 }
 0x5dd   :  { %v5813_v43 = vpop.eup %5812 }
 0x5de   :  { %v4269_v52 = vsel %vm4262_vm1, %v5813_v43, 0.0 }
 0x5df   :  { %4270 = vadd.xlane.f32.xlu0 %v4269_v52 }
 0x66c   :  { %v4271_v53 = vpop.xlane.xlu0 %4270 }
 0x66d   :  { %5814 = vlog2.f32 %v4271_v53 }
 0x677   :  { %v5815_v54 = vpop.eup %5814 }
 0x678   :  { %v4273_v55 = vmul.f32 0.6931472, %v5815_v54 }
 0x67a   :  { %v4274_v56 = vsub.f32 %v4266_v42, %v4273_v55 }
 0x67c   :  { %4275 = vst.msk [vmem:[#allocation13] sm:$0xff] %vm4262_vm1, %v4274_v56 }
 0x67d   :  { %5959 = shalt.err (!%p5956_p10)
}
 0x67e   :  { %s5960_s18 = scalar_lea.hbm %s6235_s7, 128 }
 0x67f   :  { %p5961_p11 = scmp.ne.s32.totalorder %s6235_s7, %s5960_s18  ;;  %p5964_p12 = scmp.lt.u32.totalorder %s5960_s18, %s6235_s7 }
 0x681   :  { %p5966_p13 = pnand %p5964_p12, %p5961_p11 }
 0x683   :  { %5969 = shalt.err (!%p5966_p13)
}
 0x684   :  { %4285 = dma.vmem_to_hbm [thread:$0]  %s4283_s15, 128, %s6235_s7, [#allocation4]  }
 0x685   :  { %5978 = dma.done.wait [#allocation4], 128  }
 0x686   :  { %5979 = vsyncadd [#allocation4], 4294967168 }
 0x687   :  { %4289 = vsyncpa [#allocation3], 1 }
 0x688   :  { %4290 = vsyncpa [#allocation6], 1 }
 0x689   :  { %4291 = vsyncpa [#allocation9], 1 }
 0x68a   :  { %4292 = vsyncpa [#allocation12], 1 }
 0x68b   :  { %4293 = vsyncpa [#allocation4], 1 }

</bundles_post_ra>
